<compile_context>
chip_gen: v7x
topology: tpu7x:2x2x1
jax: 0.10.0
libtpu: 0.0.40
codegen_flags: <defaults>
</compile_context>

<pallas_src>
import functools

import jax
import jax.numpy as jnp
from jax.experimental import pallas as pl
from jax.experimental.pallas import tpu as pltpu


# ------------------------------ kernel bodies --------------------------------

def _residual_path(x_ref, w1_ref, b1_ref, w2_ref, b2_ref, w3_ref, b3_ref,
                   y1p_ref, *, stride, Ho, Wo, Cm):
    """conv1(1x1)+BN+ReLU -> conv2(3x3,stride,pad1)+BN+ReLU -> conv3(1x1)+BN.

    x_ref holds one batch element in spatial phase-split layout: rows
    [p*Ho:(p+1)*Ho] of x_ref[0] are phase p = ph*stride + pw, i.e.
    x[ph::stride, pw::stride, :].  With this layout every access below is a
    contiguous slice, so the strided 3x3 conv needs neither an im2col buffer
    nor strided loads.  BN scales are pre-folded into the weights; only the
    per-channel bias is applied here.  Returns the pre-residual activation
    (Ho*Wo, Cout) in f32.
    """
    s = stride
    Cin = x_ref.shape[-1]
    HoWo = Ho * Wo

    # Zero the padded, phase-split conv1 output (zero border == conv2 padding).
    y1p_ref[...] = jnp.zeros_like(y1p_ref)

    # conv1 (1x1) + folded-BN + ReLU: a single matmul over all spatial phases.
    x_all = x_ref[0].reshape(s * s * HoWo, Cin).astype(jnp.bfloat16)
    y1_all = jnp.dot(x_all, w1_ref[...], preferred_element_type=jnp.float32)
    y1_all = jnp.maximum(y1_all + b1_ref[...], 0.0)

    # Scatter each source phase into the zero-padded, phase-split scratch.
    for ph in range(s):
        for pw in range(s):
            p = ph * s + pw
            # phase / offset of these rows inside the zero-padded map
            tp = ((ph + 1) % s) * s + (pw + 1) % s
            r0 = (ph + 1) // s
            c0 = (pw + 1) // s
            y1p_ref[tp, r0:r0 + Ho, c0:c0 + Wo, :] = (
                y1_all[p * HoWo:(p + 1) * HoWo].reshape(Ho, Wo, Cm))

    # conv2 (3x3, stride) + folded-BN + ReLU: accumulate the 9 taps.
    acc = jnp.zeros((HoWo, Cm), jnp.float32)
    for kh in range(3):
        for kw in range(3):
            patch = y1p_ref[(kh % s) * s + kw % s,
                            kh // s:kh // s + Ho,
                            kw // s:kw // s + Wo, :]           # (Ho, Wo, Cm)
            acc = acc + jnp.dot(
                patch.reshape(HoWo, Cm).astype(jnp.bfloat16),
                w2_ref[kh * 3 + kw],
                preferred_element_type=jnp.float32)
    y2 = jnp.maximum(acc + b2_ref[...], 0.0)

    # conv3 (1x1) + folded-BN (final ReLU happens after the residual add).
    y3 = jnp.dot(y2.astype(jnp.bfloat16), w3_ref[...],
                 preferred_element_type=jnp.float32)
    return y3 + b3_ref[...]


def _bottleneck_proj_kernel(x_ref, w1_ref, b1_ref, w2_ref, b2_ref, w3_ref,
                            b3_ref, ws_ref, bs_ref, o_ref, y1p_ref, *,
                            stride, Ho, Wo, Cm):
    y3 = _residual_path(x_ref, w1_ref, b1_ref, w2_ref, b2_ref, w3_ref, b3_ref,
                        y1p_ref, stride=stride, Ho=Ho, Wo=Wo, Cm=Cm)
    # Projection shortcut: 1x1 conv with stride == phase (0,0) rows of x.
    Cin = x_ref.shape[-1]
    xs = x_ref[0, 0:Ho].reshape(Ho * Wo, Cin).astype(jnp.bfloat16)
    sc = jnp.dot(xs, ws_ref[...], preferred_element_type=jnp.float32)
    sc = sc + bs_ref[...]
    o_ref[0] = jnp.maximum(y3 + sc, 0.0).astype(o_ref.dtype)


def _bottleneck_id_kernel(x_ref, w1_ref, b1_ref, w2_ref, b2_ref, w3_ref,
                          b3_ref, o_ref, y1p_ref, *, stride, Ho, Wo, Cm):
    y3 = _residual_path(x_ref, w1_ref, b1_ref, w2_ref, b2_ref, w3_ref, b3_ref,
                        y1p_ref, stride=stride, Ho=Ho, Wo=Wo, Cm=Cm)
    Cin = x_ref.shape[-1]
    sc = x_ref[0, 0:Ho].reshape(Ho * Wo, Cin).astype(jnp.float32)
    o_ref[0] = jnp.maximum(y3 + sc, 0.0).astype(o_ref.dtype)


# ------------------------------ wrapper ---------------------------------------

def _fold_bn(gamma, beta, mean, var, eps=1e-5):
    scale = gamma / jnp.sqrt(var + eps)
    bias = beta - mean * scale
    return scale.astype(jnp.float32), bias.astype(jnp.float32)


def bottleneck_forward(x_nchw, params, stride):
    """Forward pass of BottleNeck.  Input/Output: NCHW (PyTorch convention)."""
    N, Cin, H, W = x_nchw.shape
    Cm = params["w1"].shape[0]            # middle_channels
    Cout = Cm * 4                         # expansion = 4
    s = int(stride)
    if H % s != 0 or W % s != 0:
        # TODO(synk): pad H/W for strides that do not divide the spatial dims.
        raise NotImplementedError("H and W must be divisible by stride")
    Ho, Wo = H // s, W // s
    has_projection = (s != 1) or (Cin != Cout)

    # NHWC + spatial phase-split (space-to-depth), merged to rank-4:
    #   x_ps[n, p*Ho + i, j, c] = x[n, c, i*s + p//s, j*s + p%s]
    x_nhwc = jnp.transpose(x_nchw, (0, 2, 3, 1))
    x_ps = x_nhwc.reshape(N, Ho, s, Wo, s, Cin)
    x_ps = jnp.transpose(x_ps, (0, 2, 4, 1, 3, 5)).reshape(N, s * s * Ho, Wo, Cin)
    # bf16 halves x DMA bytes; keep f32 when the identity shortcut must be exact.
    x_ps = x_ps.astype(jnp.bfloat16 if has_projection else jnp.float32)

    # BN folded into per-channel scale (into weights) + bias (kernel epilogue).
    s1, b1 = _fold_bn(*params["bn1"])
    s2, b2 = _fold_bn(*params["bn2"])
    s3, b3 = _fold_bn(*params["bn3"])

    # Weights: MXU-friendly orientation, BN scale folded in (f32), cast bf16.
    w1 = (params["w1"].reshape(Cm, Cin).T * s1[None, :]).astype(jnp.bfloat16)
    w2 = jnp.transpose(params["w2"], (2, 3, 1, 0)).reshape(9, Cm, Cm)
    w2 = (w2 * s2[None, None, :]).astype(jnp.bfloat16)
    w3 = (params["w3"].reshape(Cout, Cm).T * s3[None, :]).astype(jnp.bfloat16)
    b1 = b1.reshape(1, Cm)
    b2 = b2.reshape(1, Cm)
    b3 = b3.reshape(1, Cout)

    def const_spec(shape):
        return pl.BlockSpec(shape, lambda n, _r=len(shape): (0,) * _r)

    x_spec = pl.BlockSpec((1, s * s * Ho, Wo, Cin), lambda n: (n, 0, 0, 0))
    o_spec = pl.BlockSpec((1, Ho * Wo, Cout), lambda n: (n, 0, 0))

    in_specs = [x_spec,
                const_spec((Cin, Cm)), const_spec((1, Cm)),
                const_spec((9, Cm, Cm)), const_spec((1, Cm)),
                const_spec((Cm, Cout)), const_spec((1, Cout))]
    args = [x_ps, w1, b1, w2, b2, w3, b3]
    w_bytes = int(w1.size + w2.size + w3.size) * 2

    if has_projection:
        ss, bs = _fold_bn(*params["bns"])
        ws = (params["ws"].reshape(Cout, Cin).T * ss[None, :]).astype(jnp.bfloat16)
        in_specs += [const_spec((Cin, Cout)), const_spec((1, Cout))]
        args += [ws, bs.reshape(1, Cout)]
        w_bytes += int(ws.size) * 2
        kernel = _bottleneck_proj_kernel
    else:
        kernel = _bottleneck_id_kernel
    kernel = functools.partial(kernel, stride=s, Ho=Ho, Wo=Wo, Cm=Cm)

    # Zero-padded, phase-split conv1 output kept in VMEM (f32 for simple layout).
    Hp = (H + 2 + s - 1) // s
    Wp = (W + 2 + s - 1) // s
    scratch = pltpu.VMEM((s * s, Hp, Wp, Cm), jnp.float32)

    # VMEM budget: double-buffered x/out blocks + resident weights + scratch
    # (scratch estimate is tile-padded on the last two dims).
    x_block_bytes = s * s * Ho * Wo * Cin * x_ps.dtype.itemsize
    out_block_bytes = Ho * Wo * Cout * 4
    scratch_bytes = s * s * (-(-Hp // 8) * 8) * (-(-Wp // 8) * 8) * 128 * 4
    vmem_need = 2 * (x_block_bytes + out_block_bytes) + w_bytes + scratch_bytes
    vmem_limit = int(min(48 << 20, max(16 << 20, 2 * vmem_need)))

    mm_flops = (H * W * Cin * Cm + 9 * Ho * Wo * Cm * Cm + Ho * Wo * Cm * Cout)
    if has_projection:
        mm_flops += Ho * Wo * Cin * Cout
    cost = pl.CostEstimate(
        flops=2 * N * mm_flops,
        transcendentals=0,
        bytes_accessed=N * (x_block_bytes + out_block_bytes) + w_bytes)

    out = pl.pallas_call(
        kernel,
        out_shape=jax.ShapeDtypeStruct((N, Ho * Wo, Cout), jnp.float32),
        grid=(N,),
        in_specs=in_specs,
        out_specs=o_spec,
        scratch_shapes=[scratch],
        compiler_params=pltpu.CompilerParams(
            dimension_semantics=("parallel",),
            vmem_limit_bytes=vmem_limit),
        cost_estimate=cost,
    )(*args)

    out = out.reshape(N, Ho, Wo, Cout)
    return jnp.transpose(out, (0, 3, 1, 2))                              # -> NCHW


# --------------------------- pure-JAX reference -------------------------------

def _bn_ref(y_nchw, gamma, beta, mean, var, eps=1e-5):
    g = gamma.reshape(1, -1, 1, 1)
    b = beta.reshape(1, -1, 1, 1)
    m = mean.reshape(1, -1, 1, 1)
    v = var.reshape(1, -1, 1, 1)
    return (y_nchw - m) / jnp.sqrt(v + eps) * g + b


def _conv_ref(x, w, stride, padding):
    dn = jax.lax.conv_dimension_numbers(x.shape, w.shape,
                                        ("NCHW", "OIHW", "NCHW"))
    return jax.lax.conv_general_dilated(
        x, w, window_strides=(stride, stride),
        padding=[(padding, padding), (padding, padding)],
        dimension_numbers=dn)


def bottleneck_reference(x, params, stride):
    Cm = params["w1"].shape[0]
    Cin = x.shape[1]
    Cout = Cm * 4
    y = _conv_ref(x, params["w1"], 1, 0)
    y = jnp.maximum(_bn_ref(y, *params["bn1"]), 0.0)
    y = _conv_ref(y, params["w2"], stride, 1)
    y = jnp.maximum(_bn_ref(y, *params["bn2"]), 0.0)
    y = _conv_ref(y, params["w3"], 1, 0)
    y = _bn_ref(y, *params["bn3"])
    if stride != 1 or Cin != Cout:
        s = _conv_ref(x, params["ws"], stride, 0)
        s = _bn_ref(s, *params["bns"])
    else:
        s = x
    return jnp.maximum(y + s, 0.0)


# --------------------------------- main ----------------------------------------

def make_params(key, in_channels, middle_channels):
    Cm = middle_channels
    Cout = Cm * 4
    ks = jax.random.split(key, 8)

    def bn(k, c):
        k1, k2, k3, k4 = jax.random.split(k, 4)
        gamma = 1.0 + 0.1 * jax.random.normal(k1, (c,), jnp.float32)
        beta = 0.1 * jax.random.normal(k2, (c,), jnp.float32)
        mean = 0.1 * jax.random.normal(k3, (c,), jnp.float32)
        var = jax.random.uniform(k4, (c,), jnp.float32, 0.5, 1.5)
        return (gamma, beta, mean, var)

    return {
        "w1": 0.1 * jax.random.normal(ks[0], (Cm, in_channels, 1, 1), jnp.float32),
        "bn1": bn(ks[1], Cm),
        "w2": 0.1 * jax.random.normal(ks[2], (Cm, Cm, 3, 3), jnp.float32),
        "bn2": bn(ks[3], Cm),
        "w3": 0.1 * jax.random.normal(ks[4], (Cout, Cm, 1, 1), jnp.float32),
        "bn3": bn(ks[5], Cout),
        "ws": 0.1 * jax.random.normal(ks[6], (Cout, in_channels, 1, 1), jnp.float32),
        "bns": bn(ks[7], Cout),
    }


def _run_case(key, N, Cin, H, W, middle, stride):
    kx, kp = jax.random.split(key)
    x = jax.random.normal(kx, (N, Cin, H, W), jnp.float32)
    params = make_params(kp, Cin, middle)

    out = jax.block_until_ready(bottleneck_forward(x, params, stride))
    ref = bottleneck_reference(x, params, stride)

    assert out.shape == (N, middle * 4, H // stride, W // stride), out.shape
    # bf16 MXU operands vs f32 reference -> relaxed tolerance.
    max_err = float(jnp.max(jnp.abs(out - ref)))
    assert jnp.allclose(out, ref, atol=3e-2, rtol=3e-2), max_err


if __name__ == "__main__":
    key = jax.random.PRNGKey(0)
    k1, k2 = jax.random.split(key)

    # Case A: downsampling block (stride=2) -> projection shortcut.
    _run_case(k1, N=2, Cin=16, H=16, W=16, middle=8, stride=2)
    # Case B: stride=1 with Cin == Cout -> identity shortcut.
    _run_case(k2, N=2, Cin=32, H=16, W=16, middle=8, stride=1)

    print("KERNEL_OK")
</pallas_src>

<mosaic_0001>
module attributes {stable_mosaic.version = 11 : i64} {
  func.func @_bottleneck_proj_kernel(%arg0: i32, %arg1: memref<1x32x8x16xbf16, #tpu.memory_space<vmem>>, %arg2: memref<16x8xbf16, #tpu.memory_space<vmem>>, %arg3: memref<1x8xf32, #tpu.memory_space<vmem>>, %arg4: memref<9x8x8xbf16, #tpu.memory_space<vmem>>, %arg5: memref<1x8xf32, #tpu.memory_space<vmem>>, %arg6: memref<8x32xbf16, #tpu.memory_space<vmem>>, %arg7: memref<1x32xf32, #tpu.memory_space<vmem>>, %arg8: memref<16x32xbf16, #tpu.memory_space<vmem>>, %arg9: memref<1x32xf32, #tpu.memory_space<vmem>>, %arg10: memref<1x64x32xf32, #tpu.memory_space<vmem>>, %arg11: memref<4x9x9x8xf32, #tpu.memory_space<vmem>>) attributes {dimension_semantics = [#tpu.dimension_semantics<parallel>], iteration_bounds = array<i64: 2>, scalar_prefetch = 0 : i64, scratch_operands = 1 : i64, tpu.core_type = #tpu.core_type<tc>, window_params = [{transform_indices = @transform_0, window_bounds = array<i64: 1, 32, 8, 16>}, {pipeline_mode = #tpu.pipeline_mode<synchronous>, transform_indices = @transform_1, window_bounds = array<i64: 16, 8>}, {pipeline_mode = #tpu.pipeline_mode<synchronous>, transform_indices = @transform_2, window_bounds = array<i64: 1, 8>}, {pipeline_mode = #tpu.pipeline_mode<synchronous>, transform_indices = @transform_3, window_bounds = array<i64: 9, 8, 8>}, {pipeline_mode = #tpu.pipeline_mode<synchronous>, transform_indices = @transform_4, window_bounds = array<i64: 1, 8>}, {pipeline_mode = #tpu.pipeline_mode<synchronous>, transform_indices = @transform_5, window_bounds = array<i64: 8, 32>}, {pipeline_mode = #tpu.pipeline_mode<synchronous>, transform_indices = @transform_6, window_bounds = array<i64: 1, 32>}, {pipeline_mode = #tpu.pipeline_mode<synchronous>, transform_indices = @transform_7, window_bounds = array<i64: 16, 32>}, {pipeline_mode = #tpu.pipeline_mode<synchronous>, transform_indices = @transform_8, window_bounds = array<i64: 1, 32>}, {transform_indices = @transform_9, window_bounds = array<i64: 1, 64, 32>}]} {
    %cst = arith.constant 0.000000e+00 : f32
    %0 = vector.broadcast %cst : f32 to vector<4x9x9x8xf32>
    %c0 = arith.constant 0 : index
    %c0_0 = arith.constant 0 : index
    %c0_1 = arith.constant 0 : index
    %c0_2 = arith.constant 0 : index
    %1 = vector.load %arg11[%c0, %c0_0, %c0_1, %c0_2] : memref<4x9x9x8xf32, #tpu.memory_space<vmem>>, vector<4x9x9x8xf32>
    tpu.vector_store %arg11[%c0, %c0_0, %c0_1, %c0_2], %0 {strides = array<i32>} : memref<4x9x9x8xf32, #tpu.memory_space<vmem>>, vector<4x9x9x8xf32>,
    %c0_3 = arith.constant 0 : index
    %c0_4 = arith.constant 0 : index
    %c0_5 = arith.constant 0 : index
    %c0_6 = arith.constant 0 : index
    %2 = vector.load %arg1[%c0_3, %c0_4, %c0_5, %c0_6] : memref<1x32x8x16xbf16, #tpu.memory_space<vmem>>, vector<1x32x8x16xbf16>
    %3 = vector.shape_cast %2 : vector<1x32x8x16xbf16> to vector<32x8x16xbf16>
    %4 = vector.shape_cast %3 : vector<32x8x16xbf16> to vector<256x16xbf16>
    %c0_7 = arith.constant 0 : index
    %c0_8 = arith.constant 0 : index
    %5 = vector.load %arg2[%c0_7, %c0_8] : memref<16x8xbf16, #tpu.memory_space<vmem>>, vector<16x8xbf16>
    %cst_9 = arith.constant dense<0.000000e+00> : vector<256x8xf32>
    %6 = tpu.matmul %4, %5, %cst_9 {dimension_numbers = #tpu.dot_dimension_numbers<[1], [0], [0], [1], [0, 0, 1, 1], [], []>} : vector<256x16xbf16>, vector<16x8xbf16>, vector<256x8xf32> -> vector<256x8xf32>
    %c0_10 = arith.constant 0 : index
    %c0_11 = arith.constant 0 : index
    %7 = vector.load %arg3[%c0_10, %c0_11] : memref<1x8xf32, #tpu.memory_space<vmem>>, vector<1x8xf32>
    %8 = vector.broadcast %7 : vector<1x8xf32> to vector<256x8xf32>
    %9 = arith.addf %6, %8 : vector<256x8xf32>
    %cst_12 = arith.constant 0.000000e+00 : f32
    %10 = vector.broadcast %cst_12 : f32 to vector<256x8xf32>
    %11 = arith.maximumf %9, %10 : vector<256x8xf32>
    %12 = vector.extract_strided_slice %11 {offsets = [0, 0], sizes = [64, 8], strides = [1, 1]} : vector<256x8xf32> to vector<64x8xf32>
    %13 = vector.shape_cast %12 : vector<64x8xf32> to vector<8x8x8xf32>
    %c3 = arith.constant 3 : index
    %c0_13 = arith.constant 0 : index
    %c0_14 = arith.constant 0 : index
    %c0_15 = arith.constant 0 : index
    %14 = vector.load %arg11[%c3, %c0_13, %c0_14, %c0_15] : memref<4x9x9x8xf32, #tpu.memory_space<vmem>>, vector<1x8x8x8xf32>
    %15 = vector.shape_cast %14 : vector<1x8x8x8xf32> to vector<8x8x8xf32>
    %16 = vector.shape_cast %13 : vector<8x8x8xf32> to vector<1x8x8x8xf32>
    tpu.vector_store %arg11[%c3, %c0_13, %c0_14, %c0_15], %16 {strides = array<i32>} : memref<4x9x9x8xf32, #tpu.memory_space<vmem>>, vector<1x8x8x8xf32>,
    %17 = vector.extract_strided_slice %11 {offsets = [64, 0], sizes = [64, 8], strides = [1, 1]} : vector<256x8xf32> to vector<64x8xf32>
    %18 = vector.shape_cast %17 : vector<64x8xf32> to vector<8x8x8xf32>
    %c2 = arith.constant 2 : index
    %c0_16 = arith.constant 0 : index
    %c1 = arith.constant 1 : index
    %c0_17 = arith.constant 0 : index
    %19 = vector.load %arg11[%c2, %c0_16, %c1, %c0_17] : memref<4x9x9x8xf32, #tpu.memory_space<vmem>>, vector<1x8x8x8xf32>
    %20 = vector.shape_cast %19 : vector<1x8x8x8xf32> to vector<8x8x8xf32>
    %21 = vector.shape_cast %18 : vector<8x8x8xf32> to vector<1x8x8x8xf32>
    tpu.vector_store %arg11[%c2, %c0_16, %c1, %c0_17], %21 {strides = array<i32>} : memref<4x9x9x8xf32, #tpu.memory_space<vmem>>, vector<1x8x8x8xf32>,
    %22 = vector.extract_strided_slice %11 {offsets = [128, 0], sizes = [64, 8], strides = [1, 1]} : vector<256x8xf32> to vector<64x8xf32>
    %23 = vector.shape_cast %22 : vector<64x8xf32> to vector<8x8x8xf32>
    %c1_18 = arith.constant 1 : index
    %c1_19 = arith.constant 1 : index
    %c0_20 = arith.constant 0 : index
    %c0_21 = arith.constant 0 : index
    %24 = vector.load %arg11[%c1_18, %c1_19, %c0_20, %c0_21] : memref<4x9x9x8xf32, #tpu.memory_space<vmem>>, vector<1x8x8x8xf32>
    %25 = vector.shape_cast %24 : vector<1x8x8x8xf32> to vector<8x8x8xf32>
    %26 = vector.shape_cast %23 : vector<8x8x8xf32> to vector<1x8x8x8xf32>
    tpu.vector_store %arg11[%c1_18, %c1_19, %c0_20, %c0_21], %26 {strides = array<i32>} : memref<4x9x9x8xf32, #tpu.memory_space<vmem>>, vector<1x8x8x8xf32>,
    %27 = vector.extract_strided_slice %11 {offsets = [192, 0], sizes = [64, 8], strides = [1, 1]} : vector<256x8xf32> to vector<64x8xf32>
    %28 = vector.shape_cast %27 : vector<64x8xf32> to vector<8x8x8xf32>
    %c0_22 = arith.constant 0 : index
    %c1_23 = arith.constant 1 : index
    %c1_24 = arith.constant 1 : index
    %c0_25 = arith.constant 0 : index
    %29 = vector.load %arg11[%c0_22, %c1_23, %c1_24, %c0_25] : memref<4x9x9x8xf32, #tpu.memory_space<vmem>>, vector<1x8x8x8xf32>
    %30 = vector.shape_cast %29 : vector<1x8x8x8xf32> to vector<8x8x8xf32>
    %31 = vector.shape_cast %28 : vector<8x8x8xf32> to vector<1x8x8x8xf32>
    tpu.vector_store %arg11[%c0_22, %c1_23, %c1_24, %c0_25], %31 {strides = array<i32>} : memref<4x9x9x8xf32, #tpu.memory_space<vmem>>, vector<1x8x8x8xf32>,
    %cst_26 = arith.constant 0.000000e+00 : f32
    %32 = vector.broadcast %cst_26 : f32 to vector<64x8xf32>
    %c0_27 = arith.constant 0 : index
    %c0_28 = arith.constant 0 : index
    %c0_29 = arith.constant 0 : index
    %c0_30 = arith.constant 0 : index
    %33 = vector.load %arg11[%c0_27, %c0_28, %c0_29, %c0_30] : memref<4x9x9x8xf32, #tpu.memory_space<vmem>>, vector<1x8x8x8xf32>
    %34 = vector.shape_cast %33 : vector<1x8x8x8xf32> to vector<8x8x8xf32>
    %35 = vector.shape_cast %34 : vector<8x8x8xf32> to vector<64x8xf32>
    %36 = arith.truncf %35 : vector<64x8xf32> to vector<64x8xbf16>
    %c0_31 = arith.constant 0 : index
    %c0_32 = arith.constant 0 : index
    %c0_33 = arith.constant 0 : index
    %37 = vector.load %arg4[%c0_31, %c0_32, %c0_33] : memref<9x8x8xbf16, #tpu.memory_space<vmem>>, vector<1x8x8xbf16>
    %38 = vector.shape_cast %37 : vector<1x8x8xbf16> to vector<8x8xbf16>
    %cst_34 = arith.constant dense<0.000000e+00> : vector<64x8xf32>
    %39 = tpu.matmul %36, %38, %cst_34 {dimension_numbers = #tpu.dot_dimension_numbers<[1], [0], [0], [1], [0, 0, 1, 1], [], []>} : vector<64x8xbf16>, vector<8x8xbf16>, vector<64x8xf32> -> vector<64x8xf32>
    %40 = arith.addf %32, %39 : vector<64x8xf32>
    %c1_35 = arith.constant 1 : index
    %c0_36 = arith.constant 0 : index
    %c0_37 = arith.constant 0 : index
    %c0_38 = arith.constant 0 : index
    %41 = vector.load %arg11[%c1_35, %c0_36, %c0_37, %c0_38] : memref<4x9x9x8xf32, #tpu.memory_space<vmem>>, vector<1x8x8x8xf32>
    %42 = vector.shape_cast %41 : vector<1x8x8x8xf32> to vector<8x8x8xf32>
    %43 = vector.shape_cast %42 : vector<8x8x8xf32> to vector<64x8xf32>
    %44 = arith.truncf %43 : vector<64x8xf32> to vector<64x8xbf16>
    %c1_39 = arith.constant 1 : index
    %c0_40 = arith.constant 0 : index
    %c0_41 = arith.constant 0 : index
    %45 = vector.load %arg4[%c1_39, %c0_40, %c0_41] : memref<9x8x8xbf16, #tpu.memory_space<vmem>>, vector<1x8x8xbf16>
    %46 = vector.shape_cast %45 : vector<1x8x8xbf16> to vector<8x8xbf16>
    %cst_42 = arith.constant dense<0.000000e+00> : vector<64x8xf32>
    %47 = tpu.matmul %44, %46, %cst_42 {dimension_numbers = #tpu.dot_dimension_numbers<[1], [0], [0], [1], [0, 0, 1, 1], [], []>} : vector<64x8xbf16>, vector<8x8xbf16>, vector<64x8xf32> -> vector<64x8xf32>
    %48 = arith.addf %40, %47 : vector<64x8xf32>
    %c0_43 = arith.constant 0 : index
    %c0_44 = arith.constant 0 : index
    %c1_45 = arith.constant 1 : index
    %c0_46 = arith.constant 0 : index
    %49 = vector.load %arg11[%c0_43, %c0_44, %c1_45, %c0_46] : memref<4x9x9x8xf32, #tpu.memory_space<vmem>>, vector<1x8x8x8xf32>
    %50 = vector.shape_cast %49 : vector<1x8x8x8xf32> to vector<8x8x8xf32>
    %51 = vector.shape_cast %50 : vector<8x8x8xf32> to vector<64x8xf32>
    %52 = arith.truncf %51 : vector<64x8xf32> to vector<64x8xbf16>
    %c2_47 = arith.constant 2 : index
    %c0_48 = arith.constant 0 : index
    %c0_49 = arith.constant 0 : index
    %53 = vector.load %arg4[%c2_47, %c0_48, %c0_49] : memref<9x8x8xbf16, #tpu.memory_space<vmem>>, vector<1x8x8xbf16>
    %54 = vector.shape_cast %53 : vector<1x8x8xbf16> to vector<8x8xbf16>
    %cst_50 = arith.constant dense<0.000000e+00> : vector<64x8xf32>
    %55 = tpu.matmul %52, %54, %cst_50 {dimension_numbers = #tpu.dot_dimension_numbers<[1], [0], [0], [1], [0, 0, 1, 1], [], []>} : vector<64x8xbf16>, vector<8x8xbf16>, vector<64x8xf32> -> vector<64x8xf32>
    %56 = arith.addf %48, %55 : vector<64x8xf32>
    %c2_51 = arith.constant 2 : index
    %c0_52 = arith.constant 0 : index
    %c0_53 = arith.constant 0 : index
    %c0_54 = arith.constant 0 : index
    %57 = vector.load %arg11[%c2_51, %c0_52, %c0_53, %c0_54] : memref<4x9x9x8xf32, #tpu.memory_space<vmem>>, vector<1x8x8x8xf32>
    %58 = vector.shape_cast %57 : vector<1x8x8x8xf32> to vector<8x8x8xf32>
    %59 = vector.shape_cast %58 : vector<8x8x8xf32> to vector<64x8xf32>
    %60 = arith.truncf %59 : vector<64x8xf32> to vector<64x8xbf16>
    %c3_55 = arith.constant 3 : index
    %c0_56 = arith.constant 0 : index
    %c0_57 = arith.constant 0 : index
    %61 = vector.load %arg4[%c3_55, %c0_56, %c0_57] : memref<9x8x8xbf16, #tpu.memory_space<vmem>>, vector<1x8x8xbf16>
    %62 = vector.shape_cast %61 : vector<1x8x8xbf16> to vector<8x8xbf16>
    %cst_58 = arith.constant dense<0.000000e+00> : vector<64x8xf32>
    %63 = tpu.matmul %60, %62, %cst_58 {dimension_numbers = #tpu.dot_dimension_numbers<[1], [0], [0], [1], [0, 0, 1, 1], [], []>} : vector<64x8xbf16>, vector<8x8xbf16>, vector<64x8xf32> -> vector<64x8xf32>
    %64 = arith.addf %56, %63 : vector<64x8xf32>
    %c3_59 = arith.constant 3 : index
    %c0_60 = arith.constant 0 : index
    %c0_61 = arith.constant 0 : index
    %c0_62 = arith.constant 0 : index
    %65 = vector.load %arg11[%c3_59, %c0_60, %c0_61, %c0_62] : memref<4x9x9x8xf32, #tpu.memory_space<vmem>>, vector<1x8x8x8xf32>
    %66 = vector.shape_cast %65 : vector<1x8x8x8xf32> to vector<8x8x8xf32>
    %67 = vector.shape_cast %66 : vector<8x8x8xf32> to vector<64x8xf32>
    %68 = arith.truncf %67 : vector<64x8xf32> to vector<64x8xbf16>
    %c4 = arith.constant 4 : index
    %c0_63 = arith.constant 0 : index
    %c0_64 = arith.constant 0 : index
    %69 = vector.load %arg4[%c4, %c0_63, %c0_64] : memref<9x8x8xbf16, #tpu.memory_space<vmem>>, vector<1x8x8xbf16>
    %70 = vector.shape_cast %69 : vector<1x8x8xbf16> to vector<8x8xbf16>
    %cst_65 = arith.constant dense<0.000000e+00> : vector<64x8xf32>
    %71 = tpu.matmul %68, %70, %cst_65 {dimension_numbers = #tpu.dot_dimension_numbers<[1], [0], [0], [1], [0, 0, 1, 1], [], []>} : vector<64x8xbf16>, vector<8x8xbf16>, vector<64x8xf32> -> vector<64x8xf32>
    %72 = arith.addf %64, %71 : vector<64x8xf32>
    %c2_66 = arith.constant 2 : index
    %c0_67 = arith.constant 0 : index
    %c1_68 = arith.constant 1 : index
    %c0_69 = arith.constant 0 : index
    %73 = vector.load %arg11[%c2_66, %c0_67, %c1_68, %c0_69] : memref<4x9x9x8xf32, #tpu.memory_space<vmem>>, vector<1x8x8x8xf32>
    %74 = vector.shape_cast %73 : vector<1x8x8x8xf32> to vector<8x8x8xf32>
    %75 = vector.shape_cast %74 : vector<8x8x8xf32> to vector<64x8xf32>
    %76 = arith.truncf %75 : vector<64x8xf32> to vector<64x8xbf16>
    %c5 = arith.constant 5 : index
    %c0_70 = arith.constant 0 : index
    %c0_71 = arith.constant 0 : index
    %77 = vector.load %arg4[%c5, %c0_70, %c0_71] : memref<9x8x8xbf16, #tpu.memory_space<vmem>>, vector<1x8x8xbf16>
    %78 = vector.shape_cast %77 : vector<1x8x8xbf16> to vector<8x8xbf16>
    %cst_72 = arith.constant dense<0.000000e+00> : vector<64x8xf32>
    %79 = tpu.matmul %76, %78, %cst_72 {dimension_numbers = #tpu.dot_dimension_numbers<[1], [0], [0], [1], [0, 0, 1, 1], [], []>} : vector<64x8xbf16>, vector<8x8xbf16>, vector<64x8xf32> -> vector<64x8xf32>
    %80 = arith.addf %72, %79 : vector<64x8xf32>
    %c0_73 = arith.constant 0 : index
    %c1_74 = arith.constant 1 : index
    %c0_75 = arith.constant 0 : index
    %c0_76 = arith.constant 0 : index
    %81 = vector.load %arg11[%c0_73, %c1_74, %c0_75, %c0_76] : memref<4x9x9x8xf32, #tpu.memory_space<vmem>>, vector<1x8x8x8xf32>
    %82 = vector.shape_cast %81 : vector<1x8x8x8xf32> to vector<8x8x8xf32>
    %83 = vector.shape_cast %82 : vector<8x8x8xf32> to vector<64x8xf32>
    %84 = arith.truncf %83 : vector<64x8xf32> to vector<64x8xbf16>
    %c6 = arith.constant 6 : index
    %c0_77 = arith.constant 0 : index
    %c0_78 = arith.constant 0 : index
    %85 = vector.load %arg4[%c6, %c0_77, %c0_78] : memref<9x8x8xbf16, #tpu.memory_space<vmem>>, vector<1x8x8xbf16>
    %86 = vector.shape_cast %85 : vector<1x8x8xbf16> to vector<8x8xbf16>
    %cst_79 = arith.constant dense<0.000000e+00> : vector<64x8xf32>
    %87 = tpu.matmul %84, %86, %cst_79 {dimension_numbers = #tpu.dot_dimension_numbers<[1], [0], [0], [1], [0, 0, 1, 1], [], []>} : vector<64x8xbf16>, vector<8x8xbf16>, vector<64x8xf32> -> vector<64x8xf32>
    %88 = arith.addf %80, %87 : vector<64x8xf32>
    %c1_80 = arith.constant 1 : index
    %c1_81 = arith.constant 1 : index
    %c0_82 = arith.constant 0 : index
    %c0_83 = arith.constant 0 : index
    %89 = vector.load %arg11[%c1_80, %c1_81, %c0_82, %c0_83] : memref<4x9x9x8xf32, #tpu.memory_space<vmem>>, vector<1x8x8x8xf32>
    %90 = vector.shape_cast %89 : vector<1x8x8x8xf32> to vector<8x8x8xf32>
    %91 = vector.shape_cast %90 : vector<8x8x8xf32> to vector<64x8xf32>
    %92 = arith.truncf %91 : vector<64x8xf32> to vector<64x8xbf16>
    %c7 = arith.constant 7 : index
    %c0_84 = arith.constant 0 : index
    %c0_85 = arith.constant 0 : index
    %93 = vector.load %arg4[%c7, %c0_84, %c0_85] : memref<9x8x8xbf16, #tpu.memory_space<vmem>>, vector<1x8x8xbf16>
    %94 = vector.shape_cast %93 : vector<1x8x8xbf16> to vector<8x8xbf16>
    %cst_86 = arith.constant dense<0.000000e+00> : vector<64x8xf32>
    %95 = tpu.matmul %92, %94, %cst_86 {dimension_numbers = #tpu.dot_dimension_numbers<[1], [0], [0], [1], [0, 0, 1, 1], [], []>} : vector<64x8xbf16>, vector<8x8xbf16>, vector<64x8xf32> -> vector<64x8xf32>
    %96 = arith.addf %88, %95 : vector<64x8xf32>
    %c0_87 = arith.constant 0 : index
    %c1_88 = arith.constant 1 : index
    %c1_89 = arith.constant 1 : index
    %c0_90 = arith.constant 0 : index
    %97 = vector.load %arg11[%c0_87, %c1_88, %c1_89, %c0_90] : memref<4x9x9x8xf32, #tpu.memory_space<vmem>>, vector<1x8x8x8xf32>
    %98 = vector.shape_cast %97 : vector<1x8x8x8xf32> to vector<8x8x8xf32>
    %99 = vector.shape_cast %98 : vector<8x8x8xf32> to vector<64x8xf32>
    %100 = arith.truncf %99 : vector<64x8xf32> to vector<64x8xbf16>
    %c8 = arith.constant 8 : index
    %c0_91 = arith.constant 0 : index
    %c0_92 = arith.constant 0 : index
    %101 = vector.load %arg4[%c8, %c0_91, %c0_92] : memref<9x8x8xbf16, #tpu.memory_space<vmem>>, vector<1x8x8xbf16>
    %102 = vector.shape_cast %101 : vector<1x8x8xbf16> to vector<8x8xbf16>
    %cst_93 = arith.constant dense<0.000000e+00> : vector<64x8xf32>
    %103 = tpu.matmul %100, %102, %cst_93 {dimension_numbers = #tpu.dot_dimension_numbers<[1], [0], [0], [1], [0, 0, 1, 1], [], []>} : vector<64x8xbf16>, vector<8x8xbf16>, vector<64x8xf32> -> vector<64x8xf32>
    %104 = arith.addf %96, %103 : vector<64x8xf32>
    %c0_94 = arith.constant 0 : index
    %c0_95 = arith.constant 0 : index
    %105 = vector.load %arg5[%c0_94, %c0_95] : memref<1x8xf32, #tpu.memory_space<vmem>>, vector<1x8xf32>
    %106 = vector.broadcast %105 : vector<1x8xf32> to vector<64x8xf32>
    %107 = arith.addf %104, %106 : vector<64x8xf32>
    %cst_96 = arith.constant 0.000000e+00 : f32
    %108 = vector.broadcast %cst_96 : f32 to vector<64x8xf32>
    %109 = arith.maximumf %107, %108 : vector<64x8xf32>
    %110 = arith.truncf %109 : vector<64x8xf32> to vector<64x8xbf16>
    %c0_97 = arith.constant 0 : index
    %c0_98 = arith.constant 0 : index
    %111 = vector.load %arg6[%c0_97, %c0_98] : memref<8x32xbf16, #tpu.memory_space<vmem>>, vector<8x32xbf16>
    %cst_99 = arith.constant dense<0.000000e+00> : vector<64x32xf32>
    %112 = tpu.matmul %110, %111, %cst_99 {dimension_numbers = #tpu.dot_dimension_numbers<[1], [0], [0], [1], [0, 0, 1, 1], [], []>} : vector<64x8xbf16>, vector<8x32xbf16>, vector<64x32xf32> -> vector<64x32xf32>
    %c0_100 = arith.constant 0 : index
    %c0_101 = arith.constant 0 : index
    %113 = vector.load %arg7[%c0_100, %c0_101] : memref<1x32xf32, #tpu.memory_space<vmem>>, vector<1x32xf32>
    %114 = vector.broadcast %113 : vector<1x32xf32> to vector<64x32xf32>
    %115 = arith.addf %112, %114 : vector<64x32xf32>
    %c0_102 = arith.constant 0 : index
    %c0_103 = arith.constant 0 : index
    %c0_104 = arith.constant 0 : index
    %c0_105 = arith.constant 0 : index
    %116 = vector.load %arg1[%c0_102, %c0_103, %c0_104, %c0_105] : memref<1x32x8x16xbf16, #tpu.memory_space<vmem>>, vector<1x8x8x16xbf16>
    %117 = vector.shape_cast %116 : vector<1x8x8x16xbf16> to vector<8x8x16xbf16>
    %118 = vector.shape_cast %117 : vector<8x8x16xbf16> to vector<64x16xbf16>
    %c0_106 = arith.constant 0 : index
    %c0_107 = arith.constant 0 : index
    %119 = vector.load %arg8[%c0_106, %c0_107] : memref<16x32xbf16, #tpu.memory_space<vmem>>, vector<16x32xbf16>
    %cst_108 = arith.constant dense<0.000000e+00> : vector<64x32xf32>
    %120 = tpu.matmul %118, %119, %cst_108 {dimension_numbers = #tpu.dot_dimension_numbers<[1], [0], [0], [1], [0, 0, 1, 1], [], []>} : vector<64x16xbf16>, vector<16x32xbf16>, vector<64x32xf32> -> vector<64x32xf32>
    %c0_109 = arith.constant 0 : index
    %c0_110 = arith.constant 0 : index
    %121 = vector.load %arg9[%c0_109, %c0_110] : memref<1x32xf32, #tpu.memory_space<vmem>>, vector<1x32xf32>
    %122 = vector.broadcast %121 : vector<1x32xf32> to vector<64x32xf32>
    %123 = arith.addf %120, %122 : vector<64x32xf32>
    %124 = arith.addf %115, %123 : vector<64x32xf32>
    %cst_111 = arith.constant 0.000000e+00 : f32
    %125 = vector.broadcast %cst_111 : f32 to vector<64x32xf32>
    %126 = arith.maximumf %124, %125 : vector<64x32xf32>
    %c0_112 = arith.constant 0 : index
    %c0_113 = arith.constant 0 : index
    %c0_114 = arith.constant 0 : index
    %127 = vector.load %arg10[%c0_112, %c0_113, %c0_114] : memref<1x64x32xf32, #tpu.memory_space<vmem>>, vector<1x64x32xf32>
    %128 = vector.shape_cast %127 : vector<1x64x32xf32> to vector<64x32xf32>
    %129 = vector.shape_cast %126 : vector<64x32xf32> to vector<1x64x32xf32>
    tpu.vector_store %arg10[%c0_112, %c0_113, %c0_114], %129 {strides = array<i32>} : memref<1x64x32xf32, #tpu.memory_space<vmem>>, vector<1x64x32xf32>,
    return
  }
  func.func @transform_0(%arg0: i32) -> (i32, i32, i32, i32) {
    %c0_i32 = arith.constant 0 : i32
    %c0_i32_0 = arith.constant 0 : i32
    %c0_i32_1 = arith.constant 0 : i32
    %c0_i32_2 = arith.constant 0 : i32
    return %arg0, %c0_i32, %c0_i32_0, %c0_i32_1 : i32, i32, i32, i32
  }
  func.func @transform_1(%arg0: i32) -> (i32, i32) {
    %c0_i32 = arith.constant 0 : i32
    %c0_i32_0 = arith.constant 0 : i32
    %c0_i32_1 = arith.constant 0 : i32
    return %c0_i32, %c0_i32_0 : i32, i32
  }
  func.func @transform_2(%arg0: i32) -> (i32, i32) {
    %c0_i32 = arith.constant 0 : i32
    %c0_i32_0 = arith.constant 0 : i32
    %c0_i32_1 = arith.constant 0 : i32
    return %c0_i32, %c0_i32_0 : i32, i32
  }
  func.func @transform_3(%arg0: i32) -> (i32, i32, i32) {
    %c0_i32 = arith.constant 0 : i32
    %c0_i32_0 = arith.constant 0 : i32
    %c0_i32_1 = arith.constant 0 : i32
    %c0_i32_2 = arith.constant 0 : i32
    return %c0_i32, %c0_i32_0, %c0_i32_1 : i32, i32, i32
  }
  func.func @transform_4(%arg0: i32) -> (i32, i32) {
    %c0_i32 = arith.constant 0 : i32
    %c0_i32_0 = arith.constant 0 : i32
    %c0_i32_1 = arith.constant 0 : i32
    return %c0_i32, %c0_i32_0 : i32, i32
  }
  func.func @transform_5(%arg0: i32) -> (i32, i32) {
    %c0_i32 = arith.constant 0 : i32
    %c0_i32_0 = arith.constant 0 : i32
    %c0_i32_1 = arith.constant 0 : i32
    return %c0_i32, %c0_i32_0 : i32, i32
  }
  func.func @transform_6(%arg0: i32) -> (i32, i32) {
    %c0_i32 = arith.constant 0 : i32
    %c0_i32_0 = arith.constant 0 : i32
    %c0_i32_1 = arith.constant 0 : i32
    return %c0_i32, %c0_i32_0 : i32, i32
  }
  func.func @transform_7(%arg0: i32) -> (i32, i32) {
    %c0_i32 = arith.constant 0 : i32
    %c0_i32_0 = arith.constant 0 : i32
    %c0_i32_1 = arith.constant 0 : i32
    return %c0_i32, %c0_i32_0 : i32, i32
  }
  func.func @transform_8(%arg0: i32) -> (i32, i32) {
    %c0_i32 = arith.constant 0 : i32
    %c0_i32_0 = arith.constant 0 : i32
    %c0_i32_1 = arith.constant 0 : i32
    return %c0_i32, %c0_i32_0 : i32, i32
  }
  func.func @transform_9(%arg0: i32) -> (i32, i32, i32) {
    %c0_i32 = arith.constant 0 : i32
    %c0_i32_0 = arith.constant 0 : i32
    %c0_i32_1 = arith.constant 0 : i32
    return %arg0, %c0_i32, %c0_i32_0 : i32, i32, i32
  }
}

</mosaic_0001>

<bundles_post_ra>
// kernel: tpu_custom_call.1
= control target key start
LH: loop header
LB: loop body
LE: loop exit
PB: predicated region body
PF: predicated region fallthrough
CT: control target
= control target key end

     0   :  { %s2545_s30 = smov 0   ;;  %s3012_s0 = inlined_call_operand.vmem [shape: bf16[2,32,8,16], index: 0, kind: input, shape index: {}]   ;;  %s3013_s1 = inlined_call_operand.vmem [shape: bf16[16,8], index: 1, kind: input, shape index: {}]   ;;  %s3014_s2 = inlined_call_operand.vmem [shape: f32[1,8], index: 2, kind: input, shape index: {}]   ;;  %s3015_s3 = inlined_call_operand.vmem [shape: bf16[9,8,8], index: 3, kind: input, shape index: {}]   ;;  %s3016_s4 = inlined_call_operand.vmem [shape: f32[1,8], index: 4, kind: input, shape index: {}]   ;;  %s3017_s5 = inlined_call_operand.vmem [shape: bf16[8,32], index: 5, kind: input, shape index: {}]   ;;  %s3018_s6 = inlined_call_operand.vmem [shape: f32[1,32], index: 6, kind: input, shape index: {}]   ;;  %s3019_s7 = inlined_call_operand.vmem [shape: bf16[16,32], index: 7, kind: input, shape index: {}]   ;;  %s3020_s8 = inlined_call_operand.vmem [shape: f32[1,32], index: 8, kind: input, shape index: {}]   ;;  %s3021_s9 = inlined_call_operand.vmem [shape: f32[2,64,32], index: 9, kind: output, shape index: {}]  }
   0x1 LB: > { %s2031_s10 = sadd.s32 4294967295, %s2492_s30   ;;  %p2035_p0 = scmp.ge.s32.totalorder %s2492_s30, 1  ;;  %s2492_s30 = sphi %s2545_s30, %s19_s30  }
   0x2   : > { %p287_p1 = scmp.lt.s32.totalorder %s2492_s30, 3 }
   0x4   : > { %p288_p2 = pnand %p2035_p0, %p287_p1 }
   0x5   : > { %v2464_v0 = vld [vmem:[%s3013_s1] sm:$0xff] (!%p288_p2)   ;;  %p323_p3 = scmp.lt.s32.totalorder (!%p288_p2), %s2031_s10, 1  ;;  %vm334_vm0 = vcmask (!%p288_p2), 64512   ;;  %v2494_v1 = vmov (!%p288_p2), 0.0   ;;  %vm535_vm1 = vcmask (!%p288_p2), 130048   ;;  %vm336_vm2 = vcmask (!%p288_p2), 57344  }
   0x6   : > { %291 = sbr.rel (%p288_p2) target bundleno = 875 (0x36b), region = 56  ;;  %2210 = vmatprep.subr.bf16.mxu0 (!%p288_p2), %v2464_v0  ;;  %394 = vst.msk [vmem:[#allocation2 + $0x1d0] sm:$0xff] (!%p288_p2), %vm334_vm0, %v2494_v1  ;;  %335 = vst.msk [vmem:[#allocation2] sm:$0xff] (!%p288_p2), %vm334_vm0, %v2494_v1  ;;  %v2074_v18 = vld [vmem:[%s3015_s3 + $0x4] sm:$0xf] (!%p288_p2)  ;;  %vm853_vm3 = vcmask (!%p288_p2), 1043456  }
   0x7   : > { %338 = vst.msk [vmem:[#allocation2 + $0x10] sm:$0xff] (!%p288_p2), %vm334_vm0, %v2494_v1  ;;  %340 = vst.msk [vmem:[#allocation2 + $0x20] sm:$0xff] (!%p288_p2), %vm334_vm0, %v2494_v1  ;;  %2211 = vmatpush3.bf16.msra.mxu0 (!%p288_p2), %v2464_v0  ;;  %v855_v19 = vsel (!%p288_p2), %vm853_vm3, %v2074_v18, 0  ;;  %v825_v20 = vld [vmem:[%s3015_s3] sm:$0xf] (!%p288_p2)  ;;  %vm1967_vm4 = vcmask (!%p288_p2), 261120  }
   0x8   : > { %342 = vst.msk [vmem:[#allocation2 + $0x30] sm:$0xff] (!%p288_p2), %vm334_vm0, %v2494_v1  ;;  %344 = vst.msk [vmem:[#allocation2 + $0x40] sm:$0xff] (!%p288_p2), %vm334_vm0, %v2494_v1  ;;  %2444 = vmatprep.subr.msk.bf16.mxu0 (!%p288_p2), %vm853_vm3, %v2074_v18  ;;  %v2708_v21 = vsel (!%p288_p2), %vm853_vm3, %v825_v20, 0  ;;  %2446 = vmatprep.subr.msk.bf16.mxu1 (!%p288_p2), %vm853_vm3, %v825_v20  ;;  %v2715_v22 = vld [vmem:[%s3015_s3 + $0x8] sm:$0xf] (!%p288_p2) }
   0x9   : > { %346 = vst.msk [vmem:[#allocation2 + $0x50] sm:$0xff] (!%p288_p2), %vm334_vm0, %v2494_v1  ;;  %348 = vst.msk [vmem:[#allocation2 + $0x60] sm:$0xff] (!%p288_p2), %vm334_vm0, %v2494_v1  ;;  %2355 = vmatpush3.bf16.msra.mxu1 (!%p288_p2), %v2708_v21  ;;  %v2722_v23 = vld [vmem:[%s3014_s2] ss:$0 sm:$0xff] (!%p288_p2) }
   0xa   : > { %350 = vst.msk [vmem:[#allocation2 + $0x70] sm:$0xff] (!%p288_p2), %vm334_vm0, %v2494_v1  ;;  %352 = vst.msk [vmem:[#allocation2 + $0x80] sm:$0xff] (!%p288_p2), %vm334_vm0, %v2494_v1  ;;  %2447 = vmatprep.subr.msk.bf16.mxu1 (!%p288_p2), %vm853_vm3, %v2715_v22 }
   0xb   : > { %354 = vst.msk [vmem:[#allocation2 + $0x90] sm:$0xff] (!%p288_p2), %vm334_vm0, %v2494_v1  ;;  %356 = vst.msk [vmem:[#allocation2 + $0xa0] sm:$0xff] (!%p288_p2), %vm334_vm0, %v2494_v1 }
   0xc   : > { %358 = vst.msk [vmem:[#allocation2 + $0xb0] sm:$0xff] (!%p288_p2), %vm334_vm0, %v2494_v1  ;;  %360 = vst.msk [vmem:[#allocation2 + $0xc0] sm:$0xff] (!%p288_p2), %vm334_vm0, %v2494_v1 }
   0xd   : > { %s3023_s10 = smov (!%p323_p3, %s2031_s10), 1  ;;  %362 = vst.msk [vmem:[#allocation2 + $0xd0] sm:$0xff] %vm334_vm0, %v2494_v1  ;;  %364 = vst.msk [vmem:[#allocation2 + $0xe0] sm:$0xff] %vm334_vm0, %v2494_v1 }
   0xe   : > { %366 = vst.msk [vmem:[#allocation2 + $0xf0] sm:$0xff] %vm334_vm0, %v2494_v1  ;;  %368 = vst.msk [vmem:[#allocation2 + $0x100] sm:$0xff] %vm334_vm0, %v2494_v1  ;;  %s2136_s13 = sshll.u32 %s3023_s10, 7  ;;  %s2137_s29 = sshll.u32 %s3023_s10, 6 }
   0xf   : > { %370 = vst.msk [vmem:[#allocation2 + $0x110] sm:$0xff] %vm334_vm0, %v2494_v1  ;;  %372 = vst.msk [vmem:[#allocation2 + $0x120] sm:$0xff] %vm334_vm0, %v2494_v1  ;;  %s2630_s16 = scalar_lea.vmem %s3012_s0, %s2136_s13  ;;  %s332_s12 = scalar_lea.vmem %s3021_s9, %s2137_s29 }
  0x10   : > { %374 = vst.msk [vmem:[#allocation2 + $0x130] sm:$0xff] %vm334_vm0, %v2494_v1  ;;  %376 = vst.msk [vmem:[#allocation2 + $0x140] sm:$0xff] %vm334_vm0, %v2494_v1  ;;  %v2465_v2 = vld [vmem:[%s2630_s16] sm:$0xff]   ;;  %v2466_v3 = vld [vmem:[%s2630_s16 + $0x8] sm:$0xff]  }
  0x11   : > { %378 = vst.msk [vmem:[#allocation2 + $0x150] sm:$0xff] %vm334_vm0, %v2494_v1  ;;  %380 = vst.msk [vmem:[#allocation2 + $0x160] sm:$0xff] %vm334_vm0, %v2494_v1  ;;  %2212 = vmatprep.mubr.msk.bf16.mxu0 %vm535_vm1, %v2465_v2  ;;  %v2467_v4 = vld [vmem:[%s2630_s16 + $0x10] sm:$0xff]   ;;  %v2468_v5 = vld [vmem:[%s2630_s16 + $0x18] sm:$0xff]  }
  0x12   : > { %382 = vst.msk [vmem:[#allocation2 + $0x170] sm:$0xff] %vm334_vm0, %v2494_v1  ;;  %384 = vst.msk [vmem:[#allocation2 + $0x180] sm:$0xff] %vm334_vm0, %v2494_v1  ;;  %2213 = vmatmul.mubr.msk.bf16.vlgmr.msra.gmra.mrb[0].mxu0 %vm535_vm1, %v2466_v3  ;;  %v2469_v6 = vld [vmem:[%s2630_s16 + $0x20] sm:$0xff]   ;;  %v2470_v7 = vld [vmem:[%s2630_s16 + $0x28] sm:$0xff]  }
  0x13   : > { %386 = vst.msk [vmem:[#allocation2 + $0x190] sm:$0xff] %vm334_vm0, %v2494_v1  ;;  %390 = vst.msk [vmem:[#allocation2 + $0x1b0] sm:$0xff] %vm334_vm0, %v2494_v1  ;;  %2216 = vmatprep.mubr.msk.bf16.mxu0 %vm535_vm1, %v2467_v4  ;;  %v2471_v8 = vld [vmem:[%s2630_s16 + $0x30] sm:$0xff]   ;;  %v2472_v9 = vld [vmem:[%s2630_s16 + $0x38] sm:$0xff]   ;;  %2245 = vmatpush3.bf16.msra.mxu0 %v855_v19 }
  0x14   : > { %392 = vst.msk [vmem:[#allocation2 + $0x1c0] sm:$0xff] %vm334_vm0, %v2494_v1  ;;  %396 = vst.msk [vmem:[#allocation2 + $0x1e0] sm:$0xff] %vm334_vm0, %v2494_v1  ;;  %v2473_v10 = vld [vmem:[%s2630_s16 + $0x40] sm:$0xff]   ;;  %v2474_v11 = vld [vmem:[%s2630_s16 + $0x48] sm:$0xff]   ;;  %2445 = vmatprep.subr.msk.bf16.mxu0 %vm853_vm3, %v825_v20 }
  0x15   : > { %398 = vst.msk [vmem:[#allocation2 + $0x1f0] sm:$0xff] %vm334_vm0, %v2494_v1  ;;  %400 = vst.msk [vmem:[#allocation2 + $0x200] sm:$0xff] %vm334_vm0, %v2494_v1  ;;  %v2475_v12 = vld [vmem:[%s2630_s16 + $0x50] sm:$0xff]   ;;  %v2476_v13 = vld [vmem:[%s2630_s16 + $0x58] sm:$0xff]  }
  0x16   : > { %402 = vst.msk [vmem:[#allocation2 + $0x210] sm:$0xff] %vm334_vm0, %v2494_v1  ;;  %404 = vst.msk [vmem:[#allocation2 + $0x220] sm:$0xff] %vm334_vm0, %v2494_v1  ;;  %v2477_v14 = vld [vmem:[%s2630_s16 + $0x60] sm:$0xff]   ;;  %v2478_v15 = vld [vmem:[%s2630_s16 + $0x68] sm:$0xff]  }
  0x17   : > { %v2479_v16 = vld [vmem:[%s2630_s16 + $0x70] sm:$0xff]   ;;  %v2480_v17 = vld [vmem:[%s2630_s16 + $0x78] sm:$0xff]   ;;  %377 = vst.msk [vmem:[#allocation2 + $0x148] sm:$0x1] %vm336_vm2, %v2494_v1  ;;  %337 = vst.msk [vmem:[#allocation2 + $0x8] sm:$0x1] %vm336_vm2, %v2494_v1 }
  0x18   : > { %339 = vst.msk [vmem:[#allocation2 + $0x18] sm:$0x1] %vm336_vm2, %v2494_v1  ;;  %341 = vst.msk [vmem:[#allocation2 + $0x28] sm:$0x1] %vm336_vm2, %v2494_v1 }
  0x19   : > { %343 = vst.msk [vmem:[#allocation2 + $0x38] sm:$0x1] %vm336_vm2, %v2494_v1  ;;  %345 = vst.msk [vmem:[#allocation2 + $0x48] sm:$0x1] %vm336_vm2, %v2494_v1 }
  0x1a   : > { %2217 = vmatmul.mubr.msk.bf16.gmra.mrb[4].mxu0 %vm535_vm1, %v2468_v5  ;;  %347 = vst.msk [vmem:[#allocation2 + $0x58] sm:$0x1] %vm336_vm2, %v2494_v1  ;;  %349 = vst.msk [vmem:[#allocation2 + $0x68] sm:$0x1] %vm336_vm2, %v2494_v1 }
  0x1b   : > { %2220 = vmatprep.mubr.msk.bf16.mxu0 %vm535_vm1, %v2469_v6  ;;  %351 = vst.msk [vmem:[#allocation2 + $0x78] sm:$0x1] %vm336_vm2, %v2494_v1  ;;  %353 = vst.msk [vmem:[#allocation2 + $0x88] sm:$0x1] %vm336_vm2, %v2494_v1 }
  0x1c   : > { %373 = vst.msk [vmem:[#allocation2 + $0x128] sm:$0x1] %vm336_vm2, %v2494_v1  ;;  %375 = vst.msk [vmem:[#allocation2 + $0x138] sm:$0x1] %vm336_vm2, %v2494_v1 }
  0x1d   : > { %379 = vst.msk [vmem:[#allocation2 + $0x158] sm:$0x1] %vm336_vm2, %v2494_v1  ;;  %381 = vst.msk [vmem:[#allocation2 + $0x168] sm:$0x1] %vm336_vm2, %v2494_v1 }
  0x1e   : > { %383 = vst.msk [vmem:[#allocation2 + $0x178] sm:$0x1] %vm336_vm2, %v2494_v1  ;;  %385 = vst.msk [vmem:[#allocation2 + $0x188] sm:$0x1] %vm336_vm2, %v2494_v1 }
  0x1f   : > { %387 = vst.msk [vmem:[#allocation2 + $0x198] sm:$0x1] %vm336_vm2, %v2494_v1 }
  0x22   : > { %2221 = vmatmul.mubr.msk.bf16.gmra.mrb[8].mxu0 %vm535_vm1, %v2470_v7 }
  0x23   : > { %2224 = vmatprep.mubr.msk.bf16.mxu0 %vm535_vm1, %v2471_v8 }
  0x2a   : > { %2225 = vmatmul.mubr.msk.bf16.gmra.mrb[12].mxu0 %vm535_vm1, %v2472_v9 }
  0x2b   : > { %2228 = vmatprep.mubr.msk.bf16.mxu0 %vm535_vm1, %v2473_v10 }
  0x32   : > { %2229 = vmatmul.mubr.msk.bf16.gmra.mrb[16].mxu0 %vm535_vm1, %v2474_v11 }
  0x33   : > { %2232 = vmatprep.mubr.msk.bf16.mxu0 %vm535_vm1, %v2475_v12 }
  0x3a   : > { %2233 = vmatmul.mubr.msk.bf16.gmra.mrb[20].mxu0 %vm535_vm1, %v2476_v13 }
  0x3b   : > { %2236 = vmatprep.mubr.msk.bf16.mxu0 %vm535_vm1, %v2477_v14 }
  0x42   : > { %2237 = vmatmul.mubr.msk.bf16.gmra.mrb[24].mxu0 %vm535_vm1, %v2478_v15 }
  0x43   : > { %2240 = vmatprep.mubr.msk.bf16.mxu0 %vm535_vm1, %v2479_v16 }
  0x4a   : > { %2241 = vmatmul.mubr.msk.bf16.gmra.mrb[28].mxu0 %vm535_vm1, %v2480_v17 }
  0xe5   : > { %v2214_v24 = vpop.f32.mrb[0].mxu0 }
  0xe6   : > { %v627_v25 = vadd.f32 %v2214_v24, %v2722_v23  ;;  %v618_v26 = vpop.f32.mrb[1].mxu0 }
  0xe7   : > { %v619_v27 = vadd.f32 %v2722_v23, %v618_v26  ;;  %v2215_v28 = vpop.f32.mrb[2].mxu0 }
  0xe8   : > { %v747_v29 = vmax.f32 %v627_v25, 0.0  ;;  %v630_v30 = vadd.f32 %v2215_v28, %v2722_v23  ;;  %v621_v31 = vpop.f32.mrb[3].mxu0 }
  0xe9   : > { %v745_v32 = vmax.f32 %v619_v27, 0.0  ;;  %v622_v33 = vadd.f32 %v2722_v23, %v621_v31  ;;  %v827_v31 = vld [vmem:[#allocation2 + $0x90] sm:$0xff] }
  0xea   : > { %780 = vst.msk [vmem:[#allocation2 + $0x1d0] sm:$0xff] %vm334_vm0, %v747_v29  ;;  %v748_v34 = vmax.f32 %v630_v30, 0.0 }
  0xeb   : > { %778 = vst.msk [vmem:[#allocation2 + $0x1b0] sm:$0xff] %vm334_vm0, %v745_v32  ;;  %v746_v35 = vmax.f32 %v622_v33, 0.0 }
  0xec   : > { %781 = vst.msk [vmem:[#allocation2 + $0x1e0] sm:$0xff] %vm334_vm0, %v748_v34 }
  0xed   : > { %779 = vst.msk [vmem:[#allocation2 + $0x1c0] sm:$0xff] %vm334_vm0, %v746_v35  ;;  %v2218_v36 = vpop.f32.mrb[4].mxu0 }
  0xee   : > { %v643_v37 = vadd.f32 %v2218_v36, %v2722_v23  ;;  %v634_v38 = vpop.f32.mrb[5].mxu0 }
  0xef   : > { %v635_v39 = vadd.f32 %v2722_v23, %v634_v38  ;;  %v2219_v40 = vpop.f32.mrb[6].mxu0 }
  0xf0   : > { %v751_v41 = vmax.f32 %v643_v37, 0.0  ;;  %v646_v42 = vadd.f32 %v2219_v40, %v2722_v23  ;;  %v637_v43 = vpop.f32.mrb[7].mxu0 }
  0xf1   : > { %v749_v44 = vmax.f32 %v635_v39, 0.0  ;;  %v638_v45 = vadd.f32 %v2722_v23, %v637_v43 }
  0xf2   : > { %784 = vst.msk [vmem:[#allocation2 + $0x210] sm:$0xff] %vm334_vm0, %v751_v41  ;;  %v752_v46 = vmax.f32 %v646_v42, 0.0 }
  0xf3   : > { %782 = vst.msk [vmem:[#allocation2 + $0x1f0] sm:$0xff] %vm334_vm0, %v749_v44  ;;  %v750_v47 = vmax.f32 %v638_v45, 0.0 }
  0xf4   : > { %785 = vst.msk [vmem:[#allocation2 + $0x220] sm:$0xff] %vm334_vm0, %v752_v46 }
  0xf5   : > { %783 = vst.msk [vmem:[#allocation2 + $0x200] sm:$0xff] %vm334_vm0, %v750_v47  ;;  %v2222_v48 = vpop.f32.mrb[8].mxu0 }
  0xf6   : > { %v659_v49 = vadd.f32 %v2222_v48, %v2722_v23  ;;  %v650_v50 = vpop.f32.mrb[9].mxu0 }
  0xf7   : > { %v651_v51 = vadd.f32 %v2722_v23, %v650_v50  ;;  %v2223_v52 = vpop.f32.mrb[10].mxu0 }
  0xf8   : > { %v755_v53 = vmax.f32 %v659_v49, 0.0  ;;  %v662_v54 = vadd.f32 %v2223_v52, %v2722_v23  ;;  %v653_v55 = vpop.f32.mrb[11].mxu0 }
  0xf9   : > { %v753_v56 = vmax.f32 %v651_v51, 0.0  ;;  %v654_v57 = vadd.f32 %v2722_v23, %v653_v55 }
  0xfa   : > { %789 = vst.msk [vmem:[#allocation2 + $0x141] sm:$0xff] %vm334_vm0, %v755_v53  ;;  %v756_v58 = vmax.f32 %v662_v54, 0.0 }
  0xfb   : > { %787 = vst.msk [vmem:[#allocation2 + $0x121] sm:$0xff] %vm334_vm0, %v753_v56  ;;  %v754_v59 = vmax.f32 %v654_v57, 0.0 }
  0xfc   : > { %790 = vst.msk [vmem:[#allocation2 + $0x151] sm:$0xff] %vm334_vm0, %v756_v58 }
  0xfd   : > { %788 = vst.msk [vmem:[#allocation2 + $0x131] sm:$0xff] %vm334_vm0, %v754_v59  ;;  %v2226_v60 = vpop.f32.mrb[12].mxu0 }
  0xfe   : > { %v675_v61 = vadd.f32 %v2226_v60, %v2722_v23  ;;  %v666_v62 = vpop.f32.mrb[13].mxu0 }
  0xff   : > { %v667_v63 = vadd.f32 %v2722_v23, %v666_v62  ;;  %v2227_v0 = vpop.f32.mrb[14].mxu0 }
 0x100   : > { %v759_v1 = vmax.f32 %v675_v61, 0.0  ;;  %v678_v2 = vadd.f32 %v2227_v0, %v2722_v23  ;;  %v669_v3 = vpop.f32.mrb[15].mxu0 }
 0x101   : > { %v757_v4 = vmax.f32 %v667_v63, 0.0  ;;  %v670_v5 = vadd.f32 %v2722_v23, %v669_v3 }
 0x102   : > { %793 = vst.msk [vmem:[#allocation2 + $0x181] sm:$0xff] %vm334_vm0, %v759_v1  ;;  %v760_v6 = vmax.f32 %v678_v2, 0.0 }
 0x103   : > { %791 = vst.msk [vmem:[#allocation2 + $0x161] sm:$0xff] %vm334_vm0, %v757_v4  ;;  %v758_v7 = vmax.f32 %v670_v5, 0.0  ;;  %v813_v5 = vld [vmem:[#allocation2] sm:$0xff] }
 0x104   : > { %794 = vst.msk [vmem:[#allocation2 + $0x191] sm:$0xff] %vm334_vm0, %v760_v6 }
 0x105   : > { %792 = vst.msk [vmem:[#allocation2 + $0x171] sm:$0xff] %vm334_vm0, %v758_v7  ;;  %v2230_v8 = vpop.f32.mrb[16].mxu0 }
 0x106   : > { %v691_v9 = vadd.f32 %v2230_v8, %v2722_v23  ;;  %v682_v10 = vpop.f32.mrb[17].mxu0 }
 0x107   : > { %v683_v11 = vadd.f32 %v2722_v23, %v682_v10  ;;  %v2231_v12 = vpop.f32.mrb[18].mxu0 }
 0x108   : > { %v763_v13 = vmax.f32 %v691_v9, 0.0  ;;  %v694_v14 = vadd.f32 %v2231_v12, %v2722_v23  ;;  %v685_v15 = vpop.f32.mrb[19].mxu0 }
 0x109   : > { %v761_v16 = vmax.f32 %v683_v11, 0.0  ;;  %v686_v17 = vadd.f32 %v2722_v23, %v685_v15 }
 0x10a   : > { %798 = vst.msk [vmem:[#allocation2 + $0xc0] sm:$0xff] %vm334_vm0, %v763_v13  ;;  %v764_v18 = vmax.f32 %v694_v14, 0.0 }
 0x10b   : > { %796 = vst.msk [vmem:[#allocation2 + $0xa0] sm:$0xff] %vm334_vm0, %v761_v16  ;;  %v762_v19 = vmax.f32 %v686_v17, 0.0 }
 0x10c   : > { %799 = vst.msk [vmem:[#allocation2 + $0xd0] sm:$0xff] %vm334_vm0, %v764_v18 }
 0x10d   : > { %797 = vst.msk [vmem:[#allocation2 + $0xb0] sm:$0xff] %vm334_vm0, %v762_v19  ;;  %v2234_v20 = vpop.f32.mrb[20].mxu0 }
 0x10e   : > { %v707_v24 = vadd.f32 %v2234_v20, %v2722_v23  ;;  %v698_v25 = vpop.f32.mrb[21].mxu0 }
 0x10f   : > { %v699_v26 = vadd.f32 %v2722_v23, %v698_v25  ;;  %v2235_v27 = vpop.f32.mrb[22].mxu0 }
 0x110   : > { %v767_v28 = vmax.f32 %v707_v24, 0.0  ;;  %v710_v29 = vadd.f32 %v2235_v27, %v2722_v23  ;;  %v701_v30 = vpop.f32.mrb[23].mxu0 }
 0x111   : > { %v765_v32 = vmax.f32 %v699_v26, 0.0  ;;  %v702_v33 = vadd.f32 %v2722_v23, %v701_v30  ;;  %v2773_v38 = vld [vmem:[#allocation2 + $0xc0] sm:$0xff] }
 0x112   : > { %802 = vst.msk [vmem:[#allocation2 + $0x100] sm:$0xff] %vm334_vm0, %v767_v28  ;;  %v768_v34 = vmax.f32 %v710_v29, 0.0  ;;  %v2769_v35 = vld [vmem:[#allocation2 + $0xa0] sm:$0xff] }
 0x113   : > { %800 = vst.msk [vmem:[#allocation2 + $0xe0] sm:$0xff] %vm334_vm0, %v765_v32  ;;  %v766_v36 = vmax.f32 %v702_v33, 0.0  ;;  %v835_v37 = vpack.c.bf16 %v2769_v35, %v827_v31  ;;  %v2775_v39 = vld [vmem:[#allocation2 + $0xd0] sm:$0xff]  ;;  %v1002_v29 = vld [vmem:[#allocation2 + $0x1] sm:$0xff] }
 0x114   : > { %803 = vst.msk [vmem:[#allocation2 + $0x110] sm:$0xff] %vm334_vm0, %v768_v34  ;;  %v2778_v40 = vld [vmem:[#allocation2 + $0xb0] sm:$0xff]  ;;  %v1521_v41 = vpack.c.bf16 %v2775_v39, %v2773_v38  ;;  %v1029_v34 = vsel %vm853_vm3, %v2715_v22, 0 }
 0x115   : > { %801 = vst.msk [vmem:[#allocation2 + $0xf0] sm:$0xff] %vm334_vm0, %v766_v36  ;;  %v2238_v42 = vpop.f32.mrb[24].mxu0  ;;  %2246 = vmatprep.mubr.msk.bf16.mxu0 %vm334_vm0, %v835_v37  ;;  %v836_v43 = vpack.c.bf16 %v2773_v38, %v2778_v40  ;;  %v1520_v44 = vpack.c.bf16 %v2778_v40, %v2769_v35  ;;  %v1743_v40 = vld [vmem:[%s3017_s5] sm:$0xf] }
 0x116   : > { %v723_v45 = vadd.f32 %v2238_v42, %v2722_v23  ;;  %v714_v46 = vpop.f32.mrb[25].mxu0 }
 0x117   : > { %v715_v47 = vadd.f32 %v2722_v23, %v714_v46  ;;  %v2239_v48 = vpop.f32.mrb[26].mxu0  ;;  %2247 = vmatmul.mubr.msk.bf16.vlgmr.msra.gmra.mrb[32].mxu0 %vm334_vm0, %v836_v43  ;;  %v2088_v43 = vld [vmem:[%s3015_s3 + $0xc] sm:$0xf] }
 0x118   : > { %v771_v49 = vmax.f32 %v723_v45, 0.0  ;;  %v726_v50 = vadd.f32 %v2239_v48, %v2722_v23  ;;  %v717_v51 = vpop.f32.mrb[27].mxu0  ;;  %2255 = vmatpush3.bf16.msra.mxu0 %v2708_v21  ;;  %v1131_v45 = vsel %vm853_vm3, %v2088_v43, 0  ;;  %v1105_v48 = vld [vmem:[#allocation2 + $0x130] sm:$0xff] }
 0x119   : > { %v769_v52 = vmax.f32 %v715_v47, 0.0  ;;  %v718_v53 = vadd.f32 %v2722_v23, %v717_v51  ;;  %v2803_v59 = vld [vmem:[#allocation2 + $0x100] sm:$0xff]  ;;  %v2093_v47 = vld [vmem:[%s3015_s3 + $0x10] sm:$0xf]  ;;  %2454 = vmatprep.subr.msk.bf16.mxu0 %vm853_vm3, %v1743_v40 }
 0x11a   : > { %807 = vst.msk [vmem:[#allocation2 + $0x31] sm:$0xff] %vm334_vm0, %v771_v49  ;;  %v772_v54 = vmax.f32 %v726_v50, 0.0  ;;  %v2795_v55 = vld [vmem:[#allocation2 + $0xe0] sm:$0xff] }
 0x11b   : > { %805 = vst.msk [vmem:[#allocation2 + $0x11] sm:$0xff] %vm334_vm0, %v769_v52  ;;  %v770_v56 = vmax.f32 %v718_v53, 0.0  ;;  %v837_v57 = vpack.c.bf16 %v2795_v55, %v2775_v39  ;;  %v1104_v51 = vld [vmem:[#allocation2 + $0x120] sm:$0xff]  ;;  %v1107_v53 = vld [vmem:[#allocation2 + $0x150] sm:$0xff] }
 0x11c   : > { %808 = vst.msk [vmem:[#allocation2 + $0x41] sm:$0xff] %vm334_vm0, %v772_v54  ;;  %v2801_v58 = vld [vmem:[#allocation2 + $0xf0] sm:$0xff]  ;;  %v1112_v52 = vpack.c.bf16 %v1105_v48, %v1104_v51  ;;  %v1310_v48 = vld [vmem:[#allocation2 + $0x141] sm:$0xff] }
 0x11d   : > { %806 = vst.msk [vmem:[#allocation2 + $0x21] sm:$0xff] %vm334_vm0, %v770_v56  ;;  %v2242_v21 = vpop.f32.mrb[28].mxu0  ;;  %2250 = vmatprep.mubr.msk.bf16.mxu0 %vm334_vm0, %v837_v57  ;;  %v838_v60 = vpack.c.bf16 %v2803_v59, %v2801_v58  ;;  %v1522_v61 = vpack.c.bf16 %v2801_v58, %v2795_v55  ;;  %v1109_v54 = vld [vmem:[#allocation2 + $0x170] sm:$0xff]  ;;  %v1106_v56 = vld [vmem:[#allocation2 + $0x140] sm:$0xff] }
 0x11e   : > { %v739_v62 = vadd.f32 %v2242_v21, %v2722_v23  ;;  %v730_v63 = vpop.f32.mrb[29].mxu0  ;;  %v1113_v57 = vpack.c.bf16 %v1107_v53, %v1106_v56  ;;  %v1233_v21 = vsel %vm853_vm3, %v2093_v47, 0  ;;  %v1315_v56 = vld [vmem:[#allocation2 + $0x191] sm:$0xff] }
 0x11f   : > { %v731_v0 = vadd.f32 %v2722_v23, %v730_v63  ;;  %v2243_v1 = vpop.f32.mrb[30].mxu0  ;;  %2251 = vmatmul.mubr.msk.bf16.gmra.mrb[36].mxu0 %vm334_vm0, %v838_v60  ;;  %v1108_v60 = vld [vmem:[#allocation2 + $0x160] sm:$0xff]  ;;  %v2098_v63 = vld [vmem:[%s3015_s3 + $0x14] sm:$0xf] }
 0x120   : > { %v775_v2 = vmax.f32 %v739_v62, 0.0  ;;  %v742_v3 = vadd.f32 %v2243_v1, %v2722_v23  ;;  %v733_v4 = vpop.f32.mrb[31].mxu0  ;;  %v1114_v62 = vpack.c.bf16 %v1109_v54, %v1108_v60  ;;  %v1207_v1 = vld [vmem:[#allocation2 + $0x1c0] sm:$0xff]  ;;  %v2108_v54 = vld [vmem:[%s3015_s3 + $0x1c] sm:$0xf] }
 0x121   : > { %v773_v6 = vmax.f32 %v731_v0, 0.0  ;;  %v734_v7 = vadd.f32 %v2722_v23, %v733_v4  ;;  %v2819_v10 = vld [vmem:[#allocation2 + $0x30] sm:$0xff]  ;;  %v1539_v60 = vsel %vm853_vm3, %v2108_v54, 0 }
 0x122   : > { %811 = vst.msk [vmem:[#allocation2 + $0x71] sm:$0xff] %vm334_vm0, %v775_v2  ;;  %v776_v8 = vmax.f32 %v742_v3, 0.0  ;;  %v2817_v9 = vld [vmem:[#allocation2 + $0x10] sm:$0xff]  ;;  %v1110_v2 = vld [vmem:[#allocation2 + $0x180] sm:$0xff] }
 0x123   : > { %809 = vst.msk [vmem:[#allocation2 + $0x51] sm:$0xff] %vm334_vm0, %v773_v6  ;;  %v774_v11 = vmax.f32 %v734_v7, 0.0  ;;  %v821_v12 = vpack.c.bf16 %v2817_v9, %v813_v5  ;;  %v2823_v13 = vld [vmem:[#allocation2 + $0x40] sm:$0xff]  ;;  %v2825_v14 = vld [vmem:[#allocation2 + $0x31] sm:$0xff] }
 0x124   : > { %v2827_v15 = vld [vmem:[#allocation2 + $0x41] sm:$0xff]  ;;  %812 = vst.msk [vmem:[#allocation2 + $0x81] sm:$0xff] %vm334_vm0, %v776_v8  ;;  %v2832_v16 = vld [vmem:[#allocation2 + $0x11] sm:$0xff]  ;;  %v1419_v18 = vpack.c.bf16 %v2823_v13, %v2819_v10 }
 0x125   : > { %v2830_v23 = vld [vmem:[#allocation2 + $0x20] sm:$0xff]  ;;  %v1623_v19 = vpack.c.bf16 %v2827_v15, %v2825_v14  ;;  %810 = vst.msk [vmem:[#allocation2 + $0x61] sm:$0xff] %vm334_vm0, %v774_v11  ;;  %2256 = vmatprep.mubr.msk.bf16.mxu0 %vm334_vm0, %v821_v12  ;;  %v1010_v42 = vpack.c.bf16 %v2832_v16, %v1002_v29  ;;  %v1111_v0 = vld [vmem:[#allocation2 + $0x190] sm:$0xff]  ;;  %v1335_v12 = vsel %vm853_vm3, %v2098_v63, 0  ;;  %v2103_v29 = vld [vmem:[%s3015_s3 + $0x18] sm:$0xf] }
 0x126   : > { %v2834_v17 = vld [vmem:[#allocation2 + $0x21] sm:$0xff]  ;;  %v822_v20 = vpack.c.bf16 %v2819_v10, %v2830_v23  ;;  %v1418_v24 = vpack.c.bf16 %v2830_v23, %v2817_v9  ;;  %v1115_v3 = vpack.c.bf16 %v1111_v0, %v1110_v2  ;;  %v1206_v4 = vld [vmem:[#allocation2 + $0x1b0] sm:$0xff]  ;;  %v1437_v51 = vsel %vm853_vm3, %v2103_v29, 0 }
 0x127   : > { %v1622_v25 = vpack.c.bf16 %v2834_v17, %v2832_v16  ;;  %v1011_v22 = vpack.c.bf16 %v2825_v14, %v2834_v17  ;;  %v1214_v5 = vpack.c.bf16 %v1207_v1, %v1206_v4  ;;  %v1209_v6 = vld [vmem:[#allocation2 + $0x1e0] sm:$0xff]  ;;  %v1208_v8 = vld [vmem:[#allocation2 + $0x1d0] sm:$0xff] }
 0x128   : > { %2257 = vmatmul.mubr.msk.bf16.vlgmr.msra.gmra.mrb[32].mxu0 %vm334_vm0, %v822_v20  ;;  %v1211_v7 = vld [vmem:[#allocation2 + $0x200] sm:$0xff]  ;;  %v1215_v11 = vpack.c.bf16 %v1209_v6, %v1208_v8  ;;  %v1210_v20 = vld [vmem:[#allocation2 + $0x1f0] sm:$0xff] }
 0x129   : > { %v2853_v28 = vld [vmem:[#allocation2 + $0x70] sm:$0xff] }
 0x12a   : > { %v2849_v26 = vld [vmem:[#allocation2 + $0x50] sm:$0xff] }
 0x12b   : > { %v823_v27 = vpack.c.bf16 %v2849_v26, %v2823_v13  ;;  %v2857_v31 = vld [vmem:[#allocation2 + $0x51] sm:$0xff]  ;;  %v1417_v9 = vld [vmem:[#allocation2 + $0x80] sm:$0xff] }
 0x12c   : > { %v2855_v30 = vld [vmem:[#allocation2 + $0x60] sm:$0xff]  ;;  %v1012_v46 = vpack.c.bf16 %v2857_v31, %v2827_v15  ;;  %v2888_v49 = vld [vmem:[#allocation2 + $0x71] sm:$0xff]  ;;  %v1421_v23 = vpack.c.bf16 %v1417_v9, %v2853_v28 }
 0x12d   : > { %v2859_v32 = vld [vmem:[#allocation2 + $0x61] sm:$0xff]  ;;  %2260 = vmatprep.mubr.msk.bf16.mxu1 %vm334_vm0, %v823_v27  ;;  %v824_v33 = vpack.c.bf16 %v2853_v28, %v2855_v30  ;;  %v1420_v36 = vpack.c.bf16 %v2855_v30, %v2849_v26  ;;  %v1216_v27 = vpack.c.bf16 %v1211_v7, %v1210_v20  ;;  %v1519_v13 = vld [vmem:[#allocation2 + $0x110] sm:$0xff] }
 0x12e   : > { %v1624_v37 = vpack.c.bf16 %v2859_v32, %v2857_v31  ;;  %v1013_v50 = vpack.c.bf16 %v2888_v49, %v2859_v32  ;;  %v1621_v35 = vld [vmem:[#allocation2 + $0x81] sm:$0xff] }
 0x12f   : > { %2261 = vmatmul.mubr.msk.bf16.vlgmr.msra.gmra.mrb[0].mxu1 %vm334_vm0, %v824_v33  ;;  %v1213_v33 = vld [vmem:[#allocation2 + $0x220] sm:$0xff]  ;;  %v1625_v38 = vpack.c.bf16 %v1621_v35, %v2888_v49 }
 0x130   : > { %2265 = vmatpush3.bf16.msra.mxu1 %v1029_v34  ;;  %2266 = vmatprep.mubr.msk.bf16.mxu1 %vm334_vm0, %v1010_v42  ;;  %v1309_v34 = vld [vmem:[#allocation2 + $0x131] sm:$0xff]  ;;  %v2481_v15 = vld [vmem:[%s3019_s7] sm:$0xff]  }
 0x131   : > { %2448 = vmatprep.subr.msk.bf16.mxu1 %vm853_vm3, %v2088_v43  ;;  %v1212_v42 = vld [vmem:[#allocation2 + $0x210] sm:$0xff] }
 0x132   : > { %v1217_v43 = vpack.c.bf16 %v1213_v33, %v1212_v42 }
 0x137   : > { %2267 = vmatmul.mubr.msk.bf16.vlgmr.msra.gmra.mrb[4].mxu1 %vm334_vm0, %v1011_v22  ;;  %v1308_v22 = vld [vmem:[#allocation2 + $0x121] sm:$0xff] }
 0x138   : > { %2275 = vmatpush3.bf16.msra.mxu1 %v1131_v45  ;;  %2270 = vmatprep.mubr.msk.bf16.mxu1 %vm334_vm0, %v1012_v46  ;;  %v1316_v45 = vpack.c.bf16 %v1309_v34, %v1308_v22  ;;  %v1311_v46 = vld [vmem:[#allocation2 + $0x151] sm:$0xff] }
 0x139   : > { %2449 = vmatprep.subr.msk.bf16.mxu1 %vm853_vm3, %v2093_v47  ;;  %v1313_v47 = vld [vmem:[#allocation2 + $0x171] sm:$0xff] }
 0x13f   : > { %2271 = vmatmul.mubr.msk.bf16.gmra.mrb[0].mxu1 %vm334_vm0, %v1013_v50  ;;  %v1317_v50 = vpack.c.bf16 %v1311_v46, %v1310_v48 }
 0x140   : > { %2276 = vmatprep.mubr.msk.bf16.mxu1 %vm334_vm0, %v1112_v52  ;;  %v1312_v52 = vld [vmem:[#allocation2 + $0x161] sm:$0xff] }
 0x141   : > { %v1318_v53 = vpack.c.bf16 %v1313_v47, %v1312_v52  ;;  %v2483_v52 = vld [vmem:[%s2630_s16 + $0x8] sm:$0xff]  }
 0x147   : > { %2277 = vmatmul.mubr.msk.bf16.vlgmr.msra.gmra.mrb[4].mxu1 %vm334_vm0, %v1113_v57  ;;  %v1314_v57 = vld [vmem:[#allocation2 + $0x181] sm:$0xff] }
 0x148   : > { %2285 = vmatpush3.bf16.msra.mxu1 %v1233_v21  ;;  %2280 = vmatprep.mubr.msk.bf16.mxu1 %vm334_vm0, %v1114_v62  ;;  %v1319_v21 = vpack.c.bf16 %v1315_v56, %v1314_v57  ;;  %v2113_v62 = vld [vmem:[%s3015_s3 + $0x20] sm:$0xf] }
 0x149   : > { %2450 = vmatprep.subr.msk.bf16.mxu1 %vm853_vm3, %v2098_v63  ;;  %v1641_v10 = vsel %vm853_vm3, %v2113_v62, 0  ;;  %v2119_v56 = vld [vmem:[%s3018_s6] ss:$0 sm:$0xff] }
 0x14a   : > { %v2124_v57 = vld [vmem:[%s3020_s8] ss:$0 sm:$0xff] }
 0x14f   : > { %2281 = vmatmul.mubr.msk.bf16.gmra.mrb[0].mxu1 %vm334_vm0, %v1115_v3 }
 0x150   : > { %2286 = vmatprep.mubr.msk.bf16.mxu1 %vm334_vm0, %v1214_v5 }
 0x157   : > { %2287 = vmatmul.mubr.msk.bf16.vlgmr.msra.gmra.mrb[4].mxu1 %vm334_vm0, %v1215_v11 }
 0x158   : > { %2295 = vmatpush3.bf16.msra.mxu1 %v1335_v12  ;;  %2290 = vmatprep.mubr.msk.bf16.mxu1 %vm334_vm0, %v1216_v27 }
 0x159   : > { %2451 = vmatprep.subr.msk.bf16.mxu1 %vm853_vm3, %v2103_v29 }
 0x15f   : > { %2291 = vmatmul.mubr.msk.bf16.gmra.mrb[0].mxu1 %vm334_vm0, %v1217_v43 }
 0x160   : > { %2296 = vmatprep.mubr.msk.bf16.mxu1 %vm334_vm0, %v1316_v45 }
 0x167   : > { %2297 = vmatmul.mubr.msk.bf16.vlgmr.msra.gmra.mrb[4].mxu1 %vm334_vm0, %v1317_v50 }
 0x168   : > { %2305 = vmatpush3.bf16.msra.mxu1 %v1437_v51  ;;  %2300 = vmatprep.mubr.msk.bf16.mxu1 %vm334_vm0, %v1318_v53  ;;  %v2482_v51 = vld [vmem:[%s2630_s16] sm:$0xff]   ;;  %v2484_v53 = vld [vmem:[%s2630_s16 + $0x10] sm:$0xff]  }
 0x169   : > { %2452 = vmatprep.subr.msk.bf16.mxu1 %vm853_vm3, %v2108_v54  ;;  %v2485_v54 = vld [vmem:[%s2630_s16 + $0x18] sm:$0xff]  }
 0x16f   : > { %2301 = vmatmul.mubr.msk.bf16.gmra.mrb[0].mxu1 %vm334_vm0, %v1319_v21  ;;  %v2370_v21 = vadd.f32 %v2124_v57, %v2119_v56 }
 0x170   : > { %2306 = vmatprep.mubr.msk.bf16.mxu1 %vm334_vm0, %v1418_v24 }
 0x177   : > { %2307 = vmatmul.mubr.msk.bf16.vlgmr.msra.gmra.mrb[4].mxu1 %vm334_vm0, %v1419_v18  ;;  %v1523_v18 = vpack.c.bf16 %v1519_v13, %v2803_v59 }
 0x178   : > { %2315 = vmatpush3.bf16.msra.mxu1 %v1539_v60  ;;  %2310 = vmatprep.mubr.msk.bf16.mxu1 %vm334_vm0, %v1420_v36 }
 0x179   : > { %2453 = vmatprep.subr.msk.bf16.mxu1 %vm853_vm3, %v2113_v62 }
 0x17f   : > { %2311 = vmatmul.mubr.msk.bf16.gmra.mrb[0].mxu1 %vm334_vm0, %v1421_v23 }
 0x180   : > { %2316 = vmatprep.mubr.msk.bf16.mxu1 %vm334_vm0, %v1520_v44  ;;  %v1764_v44 = vsel %vm853_vm3, %v1743_v40, 0 }
 0x181   : > { %2335 = vmatpush3.bf16.msra.mxu0 %v1764_v44 }
 0x182   : > { %2344 = vmatprep.subr.bf16.mxu0 %v2481_v15 }
 0x187   : > { %2317 = vmatmul.mubr.msk.bf16.vlgmr.msra.gmra.mrb[4].mxu1 %vm334_vm0, %v1521_v41 }
 0x188   : > { %2325 = vmatpush3.bf16.msra.mxu1 %v1641_v10  ;;  %2320 = vmatprep.mubr.msk.bf16.mxu1 %vm334_vm0, %v1522_v61 }
 0x18f   : > { %2321 = vmatmul.mubr.msk.bf16.gmra.mrb[0].mxu1 %vm334_vm0, %v1523_v18 }
 0x190   : > { %2326 = vmatprep.mubr.msk.bf16.mxu1 %vm334_vm0, %v1622_v25 }
 0x197   : > { %2327 = vmatmul.mubr.msk.bf16.vlgmr.msra.gmra.mrb[4].mxu1 %vm334_vm0, %v1623_v19  ;;  %v2118_v19 = vld [vmem:[%s3016_s4] ss:$0 sm:$0xff] }
 0x198   : > { %2330 = vmatprep.mubr.msk.bf16.mxu1 %vm334_vm0, %v1624_v37 }
 0x19f   : > { %2331 = vmatmul.mubr.msk.bf16.gmra.mrb[0].mxu1 %vm334_vm0, %v1625_v38 }
 0x1f2   : > { %v2252_v39 = vpop.f32.mrb[36].mxu0 }
 0x1f3   : > { %v907_v41 = vpop.f32.mrb[37].mxu0 }
 0x1f4   : > { %v2253_v55 = vpop.f32.mrb[38].mxu0 }
 0x1f5   : > { %v910_v58 = vpop.f32.mrb[39].mxu0 }
 0x1fb   : > { %v2258_v59 = vpop.f32.mrb[32].mxu0 }
 0x1fc   : > { %v971_v61 = vpop.f32.mrb[33].mxu0 }
 0x1fd   : > { %v2259_v14 = vpop.f32.mrb[34].mxu0 }
 0x1fe   : > { %v974_v16 = vpop.f32.mrb[35].mxu0 }
 0x26a   : > { %v2328_v17 = vpop.f32.mrb[4].mxu1 }
 0x26b   : > { %v2356_v24 = vadd.f32 %v2328_v17, %v2258_v59  ;;  %v1677_v25 = vpop.f32.mrb[5].mxu1 }
 0x26c   : > { %v2357_v26 = vadd.f32 %v1677_v25, %v971_v61  ;;  %v2329_v28 = vpop.f32.mrb[6].mxu1 }
 0x26d   : > { %v1725_v30 = vadd.f32 %v2356_v24, %v2118_v19  ;;  %v2358_v31 = vadd.f32 %v2329_v28, %v2259_v14  ;;  %v1680_v32 = vpop.f32.mrb[7].mxu1 }
 0x26e   : > { %v1723_v36 = vadd.f32 %v2357_v26, %v2118_v19  ;;  %v2359_v37 = vadd.f32 %v1680_v32, %v974_v16 }
 0x26f   : > { %v1726_v49 = vadd.f32 %v2358_v31, %v2118_v19  ;;  %v1733_v0 = vmax.f32 %v1725_v30, 0.0 }
 0x270   : > { %v1724_v63 = vadd.f32 %v2359_v37, %v2118_v19  ;;  %v1731_v2 = vmax.f32 %v1723_v36, 0.0 }
 0x271   : > { %v1734_v1 = vmax.f32 %v1726_v49, 0.0 }
 0x272   : > { %v1732_v3 = vmax.f32 %v1724_v63, 0.0  ;;  %v2332_v4 = vpop.f32.mrb[0].mxu1 }
 0x273   : > { %v1740_v5 = vpack.c.bf16 %v1734_v1, %v1733_v0  ;;  %v2360_v6 = vadd.f32 %v2332_v4, %v2252_v39  ;;  %v1693_v7 = vpop.f32.mrb[1].mxu1 }
 0x274   : > { %v1739_v8 = vpack.c.bf16 %v1732_v3, %v1731_v2  ;;  %v2361_v11 = vadd.f32 %v1693_v7, %v907_v41  ;;  %v2333_v12 = vpop.f32.mrb[2].mxu1 }
 0x275   : > { %v1729_v20 = vadd.f32 %v2360_v6, %v2118_v19  ;;  %v2362_v27 = vadd.f32 %v2333_v12, %v2253_v55  ;;  %v1696_v29 = vpop.f32.mrb[3].mxu1 }
 0x276   : > { %v1727_v33 = vadd.f32 %v2361_v11, %v2118_v19  ;;  %v2363_v34 = vadd.f32 %v1696_v29, %v910_v58  ;;  %2336 = vmatprep.mubr.msk.bf16.mxu0 %vm334_vm0, %v1739_v8 }
 0x277   : > { %v1730_v42 = vadd.f32 %v2362_v27, %v2118_v19  ;;  %2337 = vmatmul.mubr.msk.bf16.vlgmr.msra.gmra.mrb[40].mxu0 %vm334_vm0, %v1740_v5  ;;  %v1737_v22 = vmax.f32 %v1729_v20, 0.0 }
 0x278   : > { %v1728_v43 = vadd.f32 %v2363_v34, %v2118_v19  ;;  %2345 = vmatpush3.bf16.msra.mxu0 %v2481_v15  ;;  %v1735_v46 = vmax.f32 %v1727_v33, 0.0 }
 0x279   : > { %v1738_v45 = vmax.f32 %v1730_v42, 0.0 }
 0x27a   : > { %v1736_v47 = vmax.f32 %v1728_v43, 0.0 }
 0x27b   : > { %v1742_v48 = vpack.c.bf16 %v1738_v45, %v1737_v22 }
 0x27c   : > { %v1741_v50 = vpack.c.bf16 %v1736_v47, %v1735_v46 }
 0x27e   : > { %2340 = vmatprep.mubr.msk.bf16.mxu0 %vm334_vm0, %v1741_v50 }
 0x27f   : > { %2341 = vmatmul.mubr.msk.bf16.gmra.mrb[44].mxu0 %vm334_vm0, %v1742_v48 }
 0x280   : > { %2346 = vmatprep.mubr.msk.bf16.mxu0 %vm535_vm1, %v2482_v51 }
 0x287   : > { %2347 = vmatmul.mubr.msk.bf16.vlgmr.msra.gmra.mrb[40].mxu0 %vm535_vm1, %v2483_v52 }
 0x288   : > { %2350 = vmatprep.mubr.msk.bf16.mxu0 %vm535_vm1, %v2484_v53 }
 0x28f   : > { %2351 = vmatmul.mubr.msk.bf16.gmra.mrb[44].mxu0 %vm535_vm1, %v2485_v54 }
 0x35a   : > { %v2348_v60 = vpop.f32.mrb[40].mxu0 }
 0x35b   : > { %v2364_v62 = vadd.f32 %v2348_v60, %v2119_v56  ;;  %v1920_v9 = vpop.f32.mrb[41].mxu0 }
 0x35c   : > { %v2366_v23 = vadd.f32 %v2119_v56, %v1920_v9  ;;  %v2349_v10 = vpop.f32.mrb[42].mxu0 }
 0x35d   : > { %v2365_v13 = vadd.f32 %v2364_v62, %v2124_v57  ;;  %v2369_v18 = vadd.f32 %v2370_v21, %v2349_v10  ;;  %v1923_v35 = vpop.f32.mrb[43].mxu0 }
 0x35e   : > { %v2367_v38 = vadd.f32 %v2366_v23, %v2124_v57  ;;  %v2371_v39 = vadd.f32 %v2370_v21, %v1923_v35 }
 0x35f   : > { %v1961_v40 = vmax.f32 %v2365_v13, 0.0  ;;  %v1962_v41 = vmax.f32 %v2369_v18, 0.0 }
 0x360   : > { %v1959_v44 = vmax.f32 %v2367_v38, 0.0  ;;  %v1960_v55 = vmax.f32 %v2371_v39, 0.0 }
 0x361   : > { %1970 = vst.msk [vmem:[%s332_s12 + $0x10] sm:$0xff] %vm1967_vm4, %v1961_v40  ;;  %1971 = vst.msk [vmem:[%s332_s12 + $0x18] sm:$0xff] %vm1967_vm4, %v1962_v41 }
 0x362   : > { %1968 = vst.msk [vmem:[%s332_s12] sm:$0xff] %vm1967_vm4, %v1959_v44  ;;  %1969 = vst.msk [vmem:[%s332_s12 + $0x8] sm:$0xff] %vm1967_vm4, %v1960_v55  ;;  %v2352_v58 = vpop.f32.mrb[44].mxu0 }
 0x363   : > { %v2373_v59 = vadd.f32 %v2370_v21, %v2352_v58  ;;  %v1936_v61 = vpop.f32.mrb[45].mxu0 }
 0x364   : > { %v2375_v14 = vadd.f32 %v2370_v21, %v1936_v61  ;;  %v2353_v15 = vpop.f32.mrb[46].mxu0 }
 0x365   : > { %v1965_v16 = vmax.f32 %v2373_v59, 0.0  ;;  %v2377_v17 = vadd.f32 %v2370_v21, %v2353_v15  ;;  %v1939_v19 = vpop.f32.mrb[47].mxu0 }
 0x366   : > { %v1963_v24 = vmax.f32 %v2375_v14, 0.0  ;;  %v2379_v25 = vadd.f32 %v2370_v21, %v1939_v19 }
 0x367   : > { %1974 = vst.msk [vmem:[%s332_s12 + $0x30] sm:$0xff] %vm1967_vm4, %v1965_v16  ;;  %v1966_v26 = vmax.f32 %v2377_v17, 0.0 }
 0x368   : > { %1972 = vst.msk [vmem:[%s332_s12 + $0x20] sm:$0xff] %vm1967_vm4, %v1963_v24  ;;  %v1964_v28 = vmax.f32 %v2379_v25, 0.0 }
 0x369   : > { %1975 = vst.msk [vmem:[%s332_s12 + $0x38] sm:$0xff] %vm1967_vm4, %v1966_v26 }
 0x36a   : > { %1973 = vst.msk [vmem:[%s332_s12 + $0x28] sm:$0xff] %vm1967_vm4, %v1964_v28 }
 0x36b PF: > { %s19_s30 = sadd.s32 1, %s2492_s30  }
 0x36c   : > { %p16_p4 = scmp.ge.s32.totalorder %s19_s30, 4  }
 0x36e   :  { %18 = sbr.rel (!%p16_p4) target bundleno = 1 (0x1), region = 99 }

</bundles_post_ra>
